<compile_context>
chip_gen: v5e
topology: v5e:2x2
jax: 0.10.0
libtpu: 0.0.40
codegen_flags: <defaults>
</compile_context>

<pallas_src>
import inspect

import jax
import jax.numpy as jnp
import numpy as np
from jax.experimental import pallas as pl
from jax.experimental.pallas import tpu as pltpu

SELU_ALPHA = 1.6732632423543772
SELU_SCALE = 1.0507009873554805


def _selu(x):
    return SELU_SCALE * jnp.where(x > 0, x, SELU_ALPHA * (jnp.exp(x) - 1.0))


def _lse_axis1(a):
    """Numerically stable logsumexp over axis=1, keepdims (works for 2-D/3-D)."""
    mx = jnp.max(a, axis=1, keepdims=True)
    return mx + jnp.log(jnp.sum(jnp.exp(a - mx), axis=1, keepdims=True))


# --------------------------------------------------------------------------
# Padded-VMEM bookkeeping helpers (sublane pack + 128-lane rounding).
# --------------------------------------------------------------------------
def _cdiv(a, b):
    return -(-a // b)


def _round_up(x, m):
    return _cdiv(x, m) * m


def _sublane_pack(dtype):
    return max(1, 32 // jnp.dtype(dtype).itemsize)  # 8 for f32, 16 for bf16


def _pad2(rows, cols, dtype):
    """Padded VMEM bytes of a (rows, cols) tile-set of `dtype`."""
    it = jnp.dtype(dtype).itemsize
    return (_round_up(max(rows, 1), _sublane_pack(dtype))
            * _round_up(max(cols, 1), 128) * it)


def _estimate_vmem_bytes(bn, m, ed, embed_dtype, wb_specs, weight_bufs):
    """Padded-byte VMEM estimate: pipeline buffers + in-kernel temporaries."""
    use = 0
    use += 2 * bn * _pad2(m, ed, embed_dtype)            # embed blocks (double-buffered)
    use += 2 * _pad2(bn, m, jnp.float32)                 # counts blocks (2-D, lane-dense)
    use += 2 * _pad2(bn, ed, embed_dtype)                # enc output blocks
    use += 2 * _pad2(bn, 1, jnp.float32)                 # attn output blocks
    use += weight_bufs * sum(_pad2(r, c, dt) for (r, c, dt) in wb_specs)
    widest = max([ed] + [c for (_, c, _) in wb_specs])
    use += 2 * _pad2(bn * m, widest, jnp.float32)        # flattened MLP activations
    use += 3 * bn * _pad2(m, 1, jnp.float32)             # logits / softmax weights
    use += bn * _pad2(m, ed, jnp.float32)                # weighted-embed product
    return use


def _tpu_info():
    """(vmem capacity bytes, megacore?) -- conservative defaults if unknown."""
    vmem_capacity = 64 << 20                             # assume v7x-sized if unsure
    get_info = getattr(pltpu, "get_tpu_info", None)
    if get_info is not None:
        try:
            cap = getattr(get_info(), "vmem_capacity_bytes", None)
            if cap:
                vmem_capacity = int(cap)
        except Exception:
            pass
    megacore = False
    try:
        kind = jax.devices()[0].device_kind.lower()
        megacore = any(tag in kind for tag in ("v4", "v7", "7x"))
    except Exception:
        pass
    return vmem_capacity, megacore


def _choose_block_patients(n, m, ed, embed_dtype, wb_specs, weight_bufs,
                           vmem_capacity, megacore):
    per_patient = _pad2(m, ed, embed_dtype)              # padded embed bytes / patient
    # Larger targets on big-VMEM single-core chips (v5e/v6e); ~2 MiB otherwise.
    target = (4 << 20) if vmem_capacity >= (96 << 20) else (2 << 20)
    bn = max(8, (target // per_patient) // 8 * 8)        # sublane-aligned patient tiles
    bn = min(bn, 1024)
    n_ceil = _round_up(max(n, 1), 8)
    bn = min(bn, n_ceil)
    if megacore and n_ceil >= 4 * 8:
        # >= 4 grid steps so each TensorCore keeps >= 2 steps of double-buffering.
        bn = min(bn, _round_up(_cdiv(n_ceil, 4), 8))
    budget = int(0.6 * vmem_capacity)
    while bn > 8 and _estimate_vmem_bytes(
            bn, m, ed, embed_dtype, wb_specs, weight_bufs) > int(0.8 * budget):
        bn = max(8, (bn // 2) // 8 * 8)
    return bn


def _supports_single_buffered_weights():
    if not hasattr(pl, "Buffered"):
        return False
    try:
        return "pipeline_mode" in inspect.signature(pl.BlockSpec).parameters
    except (TypeError, ValueError):
        return False


# --------------------------------------------------------------------------
# Kernel
# --------------------------------------------------------------------------
def make_attention_reduce_kernel(n_attention_layers, bn, m, ed, cast_mlp_input):
    n_wb = n_attention_layers + 1                        # one folded (W;b) per linear layer

    def kernel(*refs):
        embed_ref, counts_ref = refs[0], refs[1]
        wb_refs = refs[2:2 + n_wb]
        enc_ref, attn_ref = refs[2 + n_wb], refs[3 + n_wb]

        x = embed_ref[...]                               # (bn, m, ed), native dtype
        counts2 = counts_ref[...]                        # (bn, m) f32, lane-dense

        # ---- attention MLP on ALL bn*m sequences at once (fills MXU rows) ----
        h = x.astype(jnp.float32) if cast_mlp_input else x
        h = h.reshape(bn * m, ed)
        for layer in range(n_wb):
            wb_ref = wb_refs[layer]                      # (in+1, units); bias = last row
            in_dim = wb_ref.shape[0] - 1
            w = wb_ref[:in_dim, :]
            b = wb_ref[in_dim:, :]
            h = jnp.dot(h, w, preferred_element_type=jnp.float32) + b
            if layer < n_attention_layers:
                h = _selu(h)
        atts3 = h.reshape(bn, m, 1)                      # per-sequence logits, f32

        # ---- use_counts: softmax weights of (atts + log counts).  The
        #      per-patient logsumexp(log counts) term only shifts attn. ----
        cln2 = jnp.log(counts2)                          # (bn, m)
        atts3 = atts3 + jnp.reshape(cln2, (bn, m, 1))    # tiny logits relayout
        attn3 = _lse_axis1(atts3)                        # (bn, 1, 1)
        attw3 = jnp.exp(atts3 - attn3)                   # (bn, m, 1), <= 1

        # ---- per-patient weighted reduce; widen bf16 only inside the product.
        enc2 = jnp.sum(x * attw3, axis=1)                # (bn, ed) f32, dense slab
        enc_ref[...] = enc2.astype(enc_ref.dtype)

        clse2 = _lse_axis1(cln2)                         # (bn, 1)
        attn_ref[...] = attn3.reshape(bn, 1) - clse2     # (bn, 1) f32, dense slab

    return kernel


# --------------------------------------------------------------------------
# Wrapper
# --------------------------------------------------------------------------
def attention_reduce(embed, counts, params, n_attention_layers, block_patients=None):
    """embed: (N, M, ed) f32/bf16, counts: (N, M) (> 0).
    Returns (enc (N, ed) in embed.dtype, attn (N,) f32)."""
    N, M, ed = embed.shape
    counts2 = counts.astype(jnp.float32).reshape(N, M)

    # Keep bf16 all the way into the first matmul when the flatten is free
    # (bf16 packs 16 rows / sublane); otherwise cast to f32 on the MLP path only.
    keep_native = (embed.dtype == jnp.bfloat16) and (M % 16 == 0)
    cast_mlp_input = not (embed.dtype == jnp.float32 or keep_native)

    # Fold each (W, b) into one resident (in+1, units) buffer.
    wbs = []
    for idx, (w, b) in enumerate(params):
        wdt = embed.dtype if (idx == 0 and keep_native) else jnp.float32
        wbs.append(jnp.concatenate([w.astype(wdt), b.astype(wdt)], axis=0))
    wb_specs = [(int(wb.shape[0]), int(wb.shape[1]), wb.dtype) for wb in wbs]

    single_buffer_weights = _supports_single_buffered_weights()
    weight_bufs = 1 if single_buffer_weights else 2

    vmem_capacity, megacore = _tpu_info()
    if block_patients is not None:
        bn = max(8, _round_up(int(block_patients), 8))
        bn = min(bn, _round_up(max(N, 1), 8))
    else:
        bn = _choose_block_patients(N, M, ed, embed.dtype, wb_specs, weight_bufs,
                                    vmem_capacity, megacore)

    n_pad = _round_up(max(N, 1), bn)
    if n_pad != N:
        # Padded patients: embed = 0, counts = 1 -> finite garbage, sliced off below.
        embed = jnp.pad(embed, ((0, n_pad - N), (0, 0), (0, 0)))
        counts2 = jnp.pad(counts2, ((0, n_pad - N), (0, 0)), constant_values=1.0)
    grid = (n_pad // bn,)

    kernel = make_attention_reduce_kernel(n_attention_layers, bn, M, ed, cast_mlp_input)

    def _weight_spec(shape):
        if single_buffer_weights:
            return pl.BlockSpec(shape, lambda g: (0, 0), pipeline_mode=pl.Buffered(1))
        return pl.BlockSpec(shape, lambda g: (0, 0))

    in_specs = [
        pl.BlockSpec((bn, M, ed), lambda g: (g, 0, 0)),   # embed: bn patients / step
        pl.BlockSpec((bn, M), lambda g: (g, 0)),          # counts: 2-D lane-dense block
    ]
    in_specs += [_weight_spec(wb.shape) for wb in wbs]    # resident folded weights

    out_shape = (
        jax.ShapeDtypeStruct((n_pad, ed), embed.dtype),
        jax.ShapeDtypeStruct((n_pad, 1), jnp.float32),
    )
    out_specs = (
        pl.BlockSpec((bn, ed), lambda g: (g, 0)),
        pl.BlockSpec((bn, 1), lambda g: (g, 0)),
    )

    # VMEM budget from padded tile bytes, capped at ~0.6 * physical capacity
    # (~38 MiB on v7x's 64 MiB, ~77 MiB on v5e/v6e's 128 MiB).
    usage = _estimate_vmem_bytes(bn, M, ed, embed.dtype, wb_specs, weight_bufs)
    budget = int(0.6 * vmem_capacity)
    vmem_limit = int(min(budget, max(32 << 20, 2 * usage)))
    vmem_limit = max(vmem_limit, min(usage + (8 << 20), budget))

    enc, attn = pl.pallas_call(
        kernel,
        out_shape=out_shape,
        grid_spec=pltpu.PrefetchScalarGridSpec(
            num_scalar_prefetch=0,
            grid=grid,
            in_specs=in_specs,
            out_specs=out_specs,
        ),
        compiler_params=pltpu.CompilerParams(
            dimension_semantics=("parallel",),
            vmem_limit_bytes=vmem_limit,
        ),
    )(embed, counts2, *wbs)

    return enc[:N], attn[:N, 0]


# --------------------------------------------------------------------------
# Parameter init (matches the PyTorch module) and a pure-numpy reference.
# --------------------------------------------------------------------------
def init_params(key, n_input_features, n_attention_layers, n_attention_units):
    """W ~ N(0, sqrt(1/prod(W.shape))), bias ~ U(-1/sqrt(fan_in), 1/sqrt(fan_in)).
    Weights stored transposed, i.e. (in, out), so the kernel does x @ W + b."""
    params = []
    fan_in = n_input_features
    for _ in range(n_attention_layers):
        key, kw, kb = jax.random.split(key, 3)
        std = float(np.sqrt(1.0 / (n_attention_units * fan_in)))
        w = jax.random.normal(kw, (fan_in, n_attention_units), jnp.float32) * std
        bound = float(1.0 / np.sqrt(fan_in))
        b = jax.random.uniform(kb, (1, n_attention_units), jnp.float32, -bound, bound)
        params.append((w, b))
        fan_in = n_attention_units
    key, kw, kb = jax.random.split(key, 3)
    std = float(np.sqrt(1.0 / (1 * fan_in)))
    w = jax.random.normal(kw, (fan_in, 1), jnp.float32) * std
    bound = float(1.0 / np.sqrt(fan_in))
    b = jax.random.uniform(kb, (1, 1), jnp.float32, -bound, bound)
    params.append((w, b))
    return params


def reference_np(embed, counts, params):
    """Pure-numpy reference replicating the PyTorch forward (f32 math)."""
    embed = np.asarray(jnp.asarray(embed, jnp.float32))
    counts = np.asarray(jnp.asarray(counts, jnp.float32))
    N, M, ed = embed.shape
    x = embed.reshape(N * M, ed)
    for w, b in params[:-1]:
        x = x @ np.asarray(w) + np.asarray(b)
        x = np.where(x > 0, SELU_SCALE * x, SELU_SCALE * SELU_ALPHA * (np.exp(x) - 1.0))
    w, b = params[-1]
    atts = (x @ np.asarray(w) + np.asarray(b)).reshape(N, M)

    def lse(a):
        mx = a.max(axis=1, keepdims=True)
        return mx + np.log(np.exp(a - mx).sum(axis=1, keepdims=True))

    cln = np.log(counts)
    atts = atts + cln - lse(cln)
    attn = lse(atts)
    attw = np.exp(atts - attn)
    enc = (embed * attw[:, :, None]).sum(axis=1)
    return enc.astype(np.float32), attn[:, 0].astype(np.float32)


if __name__ == "__main__":
    N, M, ED = 16, 8, 32          # patients, sequences per patient, embed features
    N_LAYERS, N_UNITS = 2, 16     # attention MLP depth / width

    key = jax.random.PRNGKey(0)
    key, k_embed, k_counts, k_params = jax.random.split(key, 4)

    embed = jax.random.normal(k_embed, (N, M, ED), jnp.float32)
    counts = jax.random.uniform(k_counts, (N, M), jnp.float32, 1.0, 10.0)
    params = init_params(k_params, ED, N_LAYERS, N_UNITS)

    enc_ref, attn_ref = reference_np(embed, counts, params)

    # f32 path, auto block size (single grid step at this toy size).
    enc, attn = attention_reduce(embed, counts, params, N_LAYERS)
    jax.block_until_ready((enc, attn))
    np.testing.assert_allclose(np.asarray(enc), enc_ref, rtol=1e-3, atol=1e-3)
    np.testing.assert_allclose(np.asarray(attn), attn_ref, rtol=1e-3, atol=1e-3)

    # f32 path, forced small block -> multi-step grid exercises the pipeline.
    enc2, attn2 = attention_reduce(embed, counts, params, N_LAYERS, block_patients=8)
    jax.block_until_ready((enc2, attn2))
    np.testing.assert_allclose(np.asarray(enc2), enc_ref, rtol=1e-3, atol=1e-3)
    np.testing.assert_allclose(np.asarray(attn2), attn_ref, rtol=1e-3, atol=1e-3)

    # bf16-embed path: native-dtype DMA (half the HBM bytes), f32 math inside.
    embed_bf16 = embed.astype(jnp.bfloat16)
    enc_b, attn_b = attention_reduce(embed_bf16, counts, params, N_LAYERS)
    jax.block_until_ready((enc_b, attn_b))
    enc_ref_b, attn_ref_b = reference_np(embed_bf16, counts, params)
    np.testing.assert_allclose(np.asarray(enc_b.astype(jnp.float32)), enc_ref_b,
                               rtol=3e-2, atol=3e-2)
    np.testing.assert_allclose(np.asarray(attn_b), attn_ref_b, rtol=5e-3, atol=5e-3)

    print("KERNEL_OK")
</pallas_src>

<mosaic_0001>
module attributes {stable_mosaic.version = 11 : i64} {
  func.func @kernel(%arg0: i32, %arg1: memref<16x8x32xf32, #tpu.memory_space<vmem>>, %arg2: memref<16x8xf32, #tpu.memory_space<vmem>>, %arg3: memref<33x16xf32, #tpu.memory_space<vmem>>, %arg4: memref<17x16xf32, #tpu.memory_space<vmem>>, %arg5: memref<17x1xf32, #tpu.memory_space<vmem>>, %arg6: memref<16x32xf32, #tpu.memory_space<vmem>>, %arg7: memref<16x1xf32, #tpu.memory_space<vmem>>) attributes {dimension_semantics = [#tpu.dimension_semantics<parallel>], iteration_bounds = array<i64: 1>, scalar_prefetch = 0 : i64, scratch_operands = 0 : i64, tpu.core_type = #tpu.core_type<tc>, window_params = [{transform_indices = @transform_0, window_bounds = array<i64: 16, 8, 32>}, {transform_indices = @transform_1, window_bounds = array<i64: 16, 8>}, {pipeline_mode = #tpu.pipeline_mode<synchronous>, transform_indices = @transform_2, window_bounds = array<i64: 33, 16>}, {pipeline_mode = #tpu.pipeline_mode<synchronous>, transform_indices = @transform_3, window_bounds = array<i64: 17, 16>}, {pipeline_mode = #tpu.pipeline_mode<synchronous>, transform_indices = @transform_4, window_bounds = array<i64: 17, 1>}, {transform_indices = @transform_5, window_bounds = array<i64: 16, 32>}, {transform_indices = @transform_6, window_bounds = array<i64: 16, 1>}]} {
    %c0 = arith.constant 0 : index
    %c0_0 = arith.constant 0 : index
    %c0_1 = arith.constant 0 : index
    %0 = vector.load %arg1[%c0, %c0_0, %c0_1] : memref<16x8x32xf32, #tpu.memory_space<vmem>>, vector<16x8x32xf32>
    %c0_2 = arith.constant 0 : index
    %c0_3 = arith.constant 0 : index
    %1 = vector.load %arg2[%c0_2, %c0_3] : memref<16x8xf32, #tpu.memory_space<vmem>>, vector<16x8xf32>
    %2 = vector.shape_cast %0 : vector<16x8x32xf32> to vector<128x32xf32>
    %c0_4 = arith.constant 0 : index
    %c0_5 = arith.constant 0 : index
    %3 = vector.load %arg3[%c0_4, %c0_5] : memref<33x16xf32, #tpu.memory_space<vmem>>, vector<32x16xf32>
    %c32 = arith.constant 32 : index
    %c0_6 = arith.constant 0 : index
    %4 = vector.load %arg3[%c32, %c0_6] : memref<33x16xf32, #tpu.memory_space<vmem>>, vector<1x16xf32>
    %cst = arith.constant dense<0.000000e+00> : vector<128x16xf32>
    %5 = tpu.matmul %2, %3, %cst {dimension_numbers = #tpu.dot_dimension_numbers<[1], [0], [0], [1], [0, 0, 1, 1], [], []>} : vector<128x32xf32>, vector<32x16xf32>, vector<128x16xf32> -> vector<128x16xf32>
    %6 = vector.broadcast %4 : vector<1x16xf32> to vector<128x16xf32>
    %7 = arith.addf %5, %6 : vector<128x16xf32>
    %cst_7 = arith.constant 0.000000e+00 : f32
    %8 = vector.broadcast %cst_7 : f32 to vector<128x16xf32>
    %9 = arith.cmpf ogt, %7, %8 : vector<128x16xf32>
    %10 = math.exp %7 : vector<128x16xf32>
    %cst_8 = arith.constant 1.000000e+00 : f32
    %11 = vector.broadcast %cst_8 : f32 to vector<128x16xf32>
    %12 = arith.subf %10, %11 : vector<128x16xf32>
    %cst_9 = arith.constant 1.67326319 : f32
    %13 = vector.broadcast %cst_9 : f32 to vector<128x16xf32>
    %14 = arith.mulf %13, %12 : vector<128x16xf32>
    %15 = arith.select %9, %7, %14 : vector<128x16xi1>, vector<128x16xf32>
    %cst_10 = arith.constant 1.05070102 : f32
    %16 = vector.broadcast %cst_10 : f32 to vector<128x16xf32>
    %17 = arith.mulf %16, %15 : vector<128x16xf32>
    %c0_11 = arith.constant 0 : index
    %c0_12 = arith.constant 0 : index
    %18 = vector.load %arg4[%c0_11, %c0_12] : memref<17x16xf32, #tpu.memory_space<vmem>>, vector<16x16xf32>
    %c16 = arith.constant 16 : index
    %c0_13 = arith.constant 0 : index
    %19 = vector.load %arg4[%c16, %c0_13] : memref<17x16xf32, #tpu.memory_space<vmem>>, vector<1x16xf32>
    %cst_14 = arith.constant dense<0.000000e+00> : vector<128x16xf32>
    %20 = tpu.matmul %17, %18, %cst_14 {dimension_numbers = #tpu.dot_dimension_numbers<[1], [0], [0], [1], [0, 0, 1, 1], [], []>} : vector<128x16xf32>, vector<16x16xf32>, vector<128x16xf32> -> vector<128x16xf32>
    %21 = vector.broadcast %19 : vector<1x16xf32> to vector<128x16xf32>
    %22 = arith.addf %20, %21 : vector<128x16xf32>
    %cst_15 = arith.constant 0.000000e+00 : f32
    %23 = vector.broadcast %cst_15 : f32 to vector<128x16xf32>
    %24 = arith.cmpf ogt, %22, %23 : vector<128x16xf32>
    %25 = math.exp %22 : vector<128x16xf32>
    %cst_16 = arith.constant 1.000000e+00 : f32
    %26 = vector.broadcast %cst_16 : f32 to vector<128x16xf32>
    %27 = arith.subf %25, %26 : vector<128x16xf32>
    %cst_17 = arith.constant 1.67326319 : f32
    %28 = vector.broadcast %cst_17 : f32 to vector<128x16xf32>
    %29 = arith.mulf %28, %27 : vector<128x16xf32>
    %30 = arith.select %24, %22, %29 : vector<128x16xi1>, vector<128x16xf32>
    %cst_18 = arith.constant 1.05070102 : f32
    %31 = vector.broadcast %cst_18 : f32 to vector<128x16xf32>
    %32 = arith.mulf %31, %30 : vector<128x16xf32>
    %c0_19 = arith.constant 0 : index
    %c0_20 = arith.constant 0 : index
    %33 = vector.load %arg5[%c0_19, %c0_20] : memref<17x1xf32, #tpu.memory_space<vmem>>, vector<16x1xf32>
    %c16_21 = arith.constant 16 : index
    %c0_22 = arith.constant 0 : index
    %34 = vector.load %arg5[%c16_21, %c0_22] : memref<17x1xf32, #tpu.memory_space<vmem>>, vector<1x1xf32>
    %cst_23 = arith.constant dense<0.000000e+00> : vector<128x1xf32>
    %35 = tpu.matmul %32, %33, %cst_23 {dimension_numbers = #tpu.dot_dimension_numbers<[1], [0], [0], [1], [0, 0, 1, 1], [], []>} : vector<128x16xf32>, vector<16x1xf32>, vector<128x1xf32> -> vector<128x1xf32>
    %36 = vector.broadcast %34 : vector<1x1xf32> to vector<128x1xf32>
    %37 = arith.addf %35, %36 : vector<128x1xf32>
    %38 = vector.shape_cast %37 : vector<128x1xf32> to vector<16x8x1xf32>
    %39 = math.log %1 : vector<16x8xf32>
    %40 = vector.shape_cast %39 : vector<16x8xf32> to vector<16x8x1xf32>
    %41 = arith.addf %38, %40 : vector<16x8x1xf32>
    %cst_24 = arith.constant dense<0xFF800000> : vector<16x1xf32>
    %42 = vector.multi_reduction <maximumf>, %41, %cst_24 [1] : vector<16x8x1xf32> to vector<16x1xf32>
    %43 = vector.shape_cast %42 : vector<16x1xf32> to vector<16x1x1xf32>
    %44 = vector.broadcast %43 : vector<16x1x1xf32> to vector<16x8x1xf32>
    %45 = arith.subf %41, %44 : vector<16x8x1xf32>
    %46 = math.exp %45 : vector<16x8x1xf32>
    %cst_25 = arith.constant dense<0.000000e+00> : vector<16x1xf32>
    %47 = vector.multi_reduction <add>, %46, %cst_25 [1] : vector<16x8x1xf32> to vector<16x1xf32>
    %48 = vector.shape_cast %47 : vector<16x1xf32> to vector<16x1x1xf32>
    %49 = math.log %48 : vector<16x1x1xf32>
    %50 = arith.addf %43, %49 : vector<16x1x1xf32>
    %51 = vector.broadcast %50 : vector<16x1x1xf32> to vector<16x8x1xf32>
    %52 = arith.subf %41, %51 : vector<16x8x1xf32>
    %53 = math.exp %52 : vector<16x8x1xf32>
    %54 = vector.broadcast %53 : vector<16x8x1xf32> to vector<16x8x32xf32>
    %55 = arith.mulf %0, %54 : vector<16x8x32xf32>
    %cst_26 = arith.constant dense<0.000000e+00> : vector<16x32xf32>
    %56 = vector.multi_reduction <add>, %55, %cst_26 [1] : vector<16x8x32xf32> to vector<16x32xf32>
    %c0_27 = arith.constant 0 : index
    %c0_28 = arith.constant 0 : index
    %57 = vector.load %arg6[%c0_27, %c0_28] : memref<16x32xf32, #tpu.memory_space<vmem>>, vector<16x32xf32>
    tpu.vector_store %arg6[%c0_27, %c0_28], %56 {strides = array<i32>} : memref<16x32xf32, #tpu.memory_space<vmem>>, vector<16x32xf32>,
    %cst_29 = arith.constant dense<0xFF800000> : vector<16xf32>
    %58 = vector.multi_reduction <maximumf>, %39, %cst_29 [1] : vector<16x8xf32> to vector<16xf32>
    %59 = vector.shape_cast %58 : vector<16xf32> to vector<16x1xf32>
    %60 = vector.broadcast %59 : vector<16x1xf32> to vector<16x8xf32>
    %61 = arith.subf %39, %60 : vector<16x8xf32>
    %62 = math.exp %61 : vector<16x8xf32>
    %cst_30 = arith.constant dense<0.000000e+00> : vector<16xf32>
    %63 = vector.multi_reduction <add>, %62, %cst_30 [1] : vector<16x8xf32> to vector<16xf32>
    %64 = vector.shape_cast %63 : vector<16xf32> to vector<16x1xf32>
    %65 = math.log %64 : vector<16x1xf32>
    %66 = arith.addf %59, %65 : vector<16x1xf32>
    %67 = vector.shape_cast %50 : vector<16x1x1xf32> to vector<16x1xf32>
    %68 = arith.subf %67, %66 : vector<16x1xf32>
    %c0_31 = arith.constant 0 : index
    %c0_32 = arith.constant 0 : index
    %69 = vector.load %arg7[%c0_31, %c0_32] : memref<16x1xf32, #tpu.memory_space<vmem>>, vector<16x1xf32>
    tpu.vector_store %arg7[%c0_31, %c0_32], %68 {strides = array<i32>} : memref<16x1xf32, #tpu.memory_space<vmem>>, vector<16x1xf32>,
    return
  }
  func.func @transform_0(%arg0: i32) -> (i32, i32, i32) {
    %c0_i32 = arith.constant 0 : i32
    %c0_i32_0 = arith.constant 0 : i32
    %c0_i32_1 = arith.constant 0 : i32
    return %arg0, %c0_i32, %c0_i32_0 : i32, i32, i32
  }
  func.func @transform_1(%arg0: i32) -> (i32, i32) {
    %c0_i32 = arith.constant 0 : i32
    %c0_i32_0 = arith.constant 0 : i32
    return %arg0, %c0_i32 : i32, i32
  }
  func.func @transform_2(%arg0: i32) -> (i32, i32) {
    %c0_i32 = arith.constant 0 : i32
    %c0_i32_0 = arith.constant 0 : i32
    %c0_i32_1 = arith.constant 0 : i32
    return %c0_i32, %c0_i32_0 : i32, i32
  }
  func.func @transform_3(%arg0: i32) -> (i32, i32) {
    %c0_i32 = arith.constant 0 : i32
    %c0_i32_0 = arith.constant 0 : i32
    %c0_i32_1 = arith.constant 0 : i32
    return %c0_i32, %c0_i32_0 : i32, i32
  }
  func.func @transform_4(%arg0: i32) -> (i32, i32) {
    %c0_i32 = arith.constant 0 : i32
    %c0_i32_0 = arith.constant 0 : i32
    %c0_i32_1 = arith.constant 0 : i32
    return %c0_i32, %c0_i32_0 : i32, i32
  }
  func.func @transform_5(%arg0: i32) -> (i32, i32) {
    %c0_i32 = arith.constant 0 : i32
    %c0_i32_0 = arith.constant 0 : i32
    return %arg0, %c0_i32 : i32, i32
  }
  func.func @transform_6(%arg0: i32) -> (i32, i32) {
    %c0_i32 = arith.constant 0 : i32
    %c0_i32_0 = arith.constant 0 : i32
    return %arg0, %c0_i32 : i32, i32
  }
}

</mosaic_0001>

<bundles_post_ra>
// kernel: tpu_custom_call.1
= control target key start
LH: loop header
LB: loop body
LE: loop exit
PB: predicated region body
PF: predicated region fallthrough
CT: control target
= control target key end

     0   :  { %12 = vsyncpa [#allocation3], 0  ;;  %s2440_s0 = inlined_call_operand.hbm [shape: f32[16,8,32], index: 0, kind: input, shape index: {}]   ;;  %s2441_s1 = inlined_call_operand.vmem [shape: f32[16,8], index: 1, kind: input, shape index: {}]   ;;  %s2442_s2 = inlined_call_operand.vmem [shape: f32[33,16], index: 2, kind: input, shape index: {}]   ;;  %s2443_s3 = inlined_call_operand.vmem [shape: f32[17,16], index: 3, kind: input, shape index: {}]   ;;  %s2444_s4 = inlined_call_operand.vmem [shape: f32[17,1], index: 4, kind: input, shape index: {}]   ;;  %s2445_s5 = inlined_call_operand.hbm [shape: f32[16,32], index: 5, kind: output, shape index: {0}]   ;;  %s2446_s6 = inlined_call_operand.vmem [shape: f32[16,1], index: 6, kind: output, shape index: {1}]  }
   0x1   :  { %13 = vsyncpa [#allocation4], 0  ;;  %s18_s23 = sshll.u32 %s2440_s0, 4  ;;  %s1872_s24 = smov [#allocation2]   ;;  %s19_s23 = int_to_ptr.hbm [resolvable:$true] %s18_s23 }
   0x2   :  { %s20_s25 = sshll.u32 %s1872_s24, 4  ;;  %s1873_s26 = smov 128   ;;  %s21_s25 = int_to_ptr.vmem [resolvable:$true] %s20_s25 }
   0x3   :  { %s1874_s27 = smov 8  }
   0x4   :  { %26 = dma.hbm_to_vmem [thread:$0]  %s19_s23, 2048, %s21_s25, [#allocation3], %s1873_s26, %s1873_s26, %s1874_s27  }
   0x5   :  { %1868 = dma.done.wait [#allocation3], 2048  }
   0x6   :  { %1869 = vsyncadd [#allocation3], 4294965248  ;;  %v60_v0 = vld [vmem:[%s2442_s2 + $0x18] sm:$0xff]  ;;  %v59_v1 = vld [vmem:[%s2442_s2 + $0x10] sm:$0xff]  ;;  %vm63_vm0 = vcmask 261120   ;;  %v641_v20 = vlaneseq  ;;  %vm293_vm2 = vcmask 130048  }
   0x7   :  { %124 = vmatpush.msra.mxu0 %v60_v0  ;;  %1610 = vmatpush.msra.mxu3 %v60_v0  ;;  %v58_v2 = vld [vmem:[%s2442_s2 + $0x8] sm:$0xff]  ;;  %v57_v3 = vld [vmem:[%s2442_s2] sm:$0xff]  ;;  %v41_v8 = vld [vmem:[#allocation2 + $0x10] sm:$0xff]  ;;  %vm1386_vm11 = vcmask 64512   ;;  %s1513_s9 = sshll.u32 %s2445_s5, 4  ;;  %s1514_s9 = int_to_ptr.hbm [resolvable:$true] %s1513_s9 }
   0x8   :  { %v39_v4 = vld [vmem:[#allocation2] sm:$0xff]  ;;  %v40_v6 = vld [vmem:[#allocation2 + $0x8] sm:$0xff]  ;;  %v53_v9 = vld [vmem:[#allocation2 + $0x70] sm:$0xff]  ;;  %v642_v22 = vshrl.u32 %v641_v20, 7 }
   0x9   :  { %125 = vmatpush.msra.mxu0 %v59_v1  ;;  %1611 = vmatpush.msra.mxu3 %v59_v1  ;;  %v51_v5 = vld [vmem:[#allocation2 + $0x60] sm:$0xff]  ;;  %v52_v7 = vld [vmem:[#allocation2 + $0x68] sm:$0xff]  ;;  %v42_v10 = vld [vmem:[#allocation2 + $0x18] sm:$0xff] }
   0xa   :  { %v54_v11 = vld [vmem:[#allocation2 + $0x78] sm:$0xff]  ;;  %v43_v12 = vld [vmem:[#allocation2 + $0x20] sm:$0xff]  ;;  %v44_v13 = vld [vmem:[#allocation2 + $0x28] sm:$0xff]  ;;  %1625 = vset.pattern.permute.xlu2 %v642_v22  ;;  %1623 = vset.pattern.permute.xlu0 %v642_v22 }
   0xb   :  { %126 = vmatpush.msra.mxu0 %v58_v2  ;;  %1612 = vmatpush.msra.mxu3 %v58_v2  ;;  %v45_v14 = vld [vmem:[#allocation2 + $0x30] sm:$0xff]  ;;  %v46_v15 = vld [vmem:[#allocation2 + $0x38] sm:$0xff]  ;;  %v47_v16 = vld [vmem:[#allocation2 + $0x40] sm:$0xff] }
   0xc   :  { %v48_v17 = vld [vmem:[#allocation2 + $0x48] sm:$0xff]  ;;  %v49_v18 = vld [vmem:[#allocation2 + $0x50] sm:$0xff]  ;;  %v50_v19 = vld [vmem:[#allocation2 + $0x58] sm:$0xff]  ;;  %1624 = vset.pattern.permute.xlu1 %v642_v22 }
   0xd   :  { %127 = vmatpush.msra.mxu0 %v57_v3  ;;  %1613 = vmatpush.msra.mxu3 %v57_v3  ;;  %v55_v21 = vld [vmem:[%s2441_s1] sm:$0xff]  ;;  %v290_v24 = vld [vmem:[%s2443_s3 + $0x8] sm:$0xff] }
   0xe   :  { %1530 = vmatmul.msk.f32.vlgmr.msra.gmra.mxu0 %vm63_vm0, %v39_v4  ;;  %1542 = vmatmul.msk.f32.vlgmr.msra.gmra.mxu3 %vm63_vm0, %v51_v5  ;;  %1632 = vlog2.f32 %v55_v21  ;;  %v289_v26 = vld [vmem:[%s2443_s3] sm:$0xff]  ;;  %v56_v28 = vld [vmem:[%s2441_s1 + $0x8] sm:$0xff] }
   0xf   :  { %356 = vmatpush.msra.mxu1 %v290_v24  ;;  %1614 = vmatpush.msrb.mxu3 %v290_v24  ;;  %1634 = vlog2.f32 %v56_v28  ;;  %v1966_v31 = vld [vmem:[%s2442_s2 + $0x20] ss:$0 sm:$0xff] }
  0x11   :  { %357 = vmatpush.msra.mxu1 %v289_v26  ;;  %1615 = vmatpush.msrb.mxu3 %v289_v26 }
  0x14   :  { %v1633_v23 = vpop.eup %1632 }
  0x15   :  { %v1952_v25 = vmul.f32 0.6931472, %v1633_v23  ;;  %v1635_v32 = vpop.eup %1634 }
  0x16   :  { %1531 = vmatmul.msk.f32.gmra.mxu0 %vm63_vm0, %v40_v6  ;;  %1543 = vmatmul.msk.f32.gmra.mxu3 %vm63_vm0, %v52_v7  ;;  %v1968_v33 = vmul.f32 0.6931472, %v1635_v32 }
  0x17   :  { %v668_v27 = vperm.slane %v1952_v25, 4  ;;  %v675_v29 = vperm.slane %v1952_v25, 5  ;;  %v640_v30 = vperm.slane %v1952_v25, 0  ;;  %v647_v37 = vperm.slane %v1952_v25, 1 }
  0x18   :  { %v696_v36 = vperm.slane %v1968_v33, 0  ;;  %v717_v42 = vperm.slane %v1968_v33, 3  ;;  %v682_v43 = vperm.slane %v1952_v25, 6  ;;  %v738_v55 = vperm.slane %v1968_v33, 6 }
  0x19   :  { %673 = vperm.xlu2 %1625, %v668_v27   ;;  %645 = vperm.xlu0 %1623, %v640_v30   ;;  %v703_v56 = vperm.slane %v1968_v33, 1  ;;  %v724_v6 = vperm.slane %v1968_v33, 4  ;;  %v745_v23 = vperm.slane %v1968_v33, 7 }
  0x1e   :  { %1532 = vmatmul.msk.f32.gmra.mxu0 %vm63_vm0, %v41_v8  ;;  %1544 = vmatmul.msk.f32.gmra.mxu3 %vm63_vm0, %v53_v9 }
  0x21   :  { %680 = vperm.xlu2 %1625, %v675_v29   ;;  %652 = vperm.xlu0 %1623, %v647_v37  }
  0x26   :  { %1533 = vmatmul.msk.f32.gmra.mxu0 %vm63_vm0, %v42_v10  ;;  %1545 = vmatmul.msk.f32.gmra.mxu3 %vm63_vm0, %v54_v11 }
  0x29   :  { %701 = vperm.xlu2 %1625, %v696_v36   ;;  %687 = vperm.xlu0 %1623, %v682_v43  }
  0x2e   :  { %1534 = vmatmul.msk.f32.gmra.mxu0 %vm63_vm0, %v43_v12 }
  0x31   :  { %722 = vperm.xlu2 %1625, %v717_v42   ;;  %708 = vperm.xlu0 %1623, %v703_v56  }
  0x36   :  { %1535 = vmatmul.msk.f32.gmra.mxu0 %vm63_vm0, %v44_v13 }
  0x39   :  { %743 = vperm.xlu2 %1625, %v738_v55   ;;  %729 = vperm.xlu0 %1623, %v724_v6  }
  0x3e   :  { %1536 = vmatmul.msk.f32.gmra.mxu0 %vm63_vm0, %v45_v14 }
  0x41   :  { %750 = vperm.xlu0 %1623, %v745_v23  }
  0x46   :  { %1537 = vmatmul.msk.f32.gmra.mxu0 %vm63_vm0, %v46_v15 }
  0x4e   :  { %1538 = vmatmul.msk.f32.gmra.mxu0 %vm63_vm0, %v47_v16 }
  0x56   :  { %1539 = vmatmul.msk.f32.gmra.mxu0 %vm63_vm0, %v48_v17 }
  0x5e   :  { %1540 = vmatmul.msk.f32.gmra.mxu0 %vm63_vm0, %v49_v18 }
  0x66   :  { %1541 = vmatmul.msk.f32.gmra.mxu0 %vm63_vm0, %v50_v19 }
  0x8b   :  { %v129_v34 = vpop.f32.mrf.mxu0 }
  0x8c   :  { %v130_v35 = vadd.f32 %v1966_v31, %v129_v34 }
  0x8e   :  { %v193_v38 = vmul.f32 1.442695, %v130_v35  ;;  %vm177_vm1 = vcmp.gt.f32.partialorder %v130_v35, 0.0 }
  0x90   :  { %1636 = vpow2.f32 %v193_v38 }
  0x91   :  { %v1973_v39 = vpop.f32.mrf.mxu3 }
  0x93   :  { %v132_v40 = vpop.f32.mrf.mxu0 }
  0x94   :  { %v133_v41 = vadd.f32 %v1966_v31, %v132_v40 }
  0x96   :  { %v1637_v44 = vpop.eup %1636  ;;  %v195_v45 = vmul.f32 1.442695, %v133_v41  ;;  %vm178_vm3 = vcmp.gt.f32.partialorder %v133_v41, 0.0 }
  0x97   :  { %v1546_v46 = vadd.f32 -1.0, %v1637_v44 }
  0x98   :  { %1638 = vpow2.f32 %v195_v45 }
  0x99   :  { %v241_v47 = vmul.f32 1.6732632, %v1546_v46  ;;  %v168_v48 = vpop.f32.mrf.mxu3 }
  0x9a   :  { %v169_v49 = vadd.f32 %v1966_v31, %v168_v48 }
  0x9b   :  { %v135_v50 = vpop.f32.mrf.mxu0  ;;  %v257_v51 = vsel %vm177_vm1, %v130_v35, %v241_v47 }
  0x9c   :  { %v219_v52 = vmul.f32 1.442695, %v169_v49  ;;  %v136_v53 = vadd.f32 %v1966_v31, %v135_v50  ;;  %v273_v54 = vmul.f32 1.050701, %v257_v51  ;;  %vm190_vm4 = vcmp.gt.f32.partialorder %v169_v49, 0.0 }
  0x9e   :  { %v1639_v57 = vpop.eup %1638  ;;  %1640 = vpow2.f32 %v219_v52  ;;  %v197_v58 = vmul.f32 1.442695, %v136_v53  ;;  %1562 = vmatmul.msk.f32.vlgmr.msra.gmra.mxu1 %vm293_vm2, %v273_v54  ;;  %vm179_vm5 = vcmp.gt.f32.partialorder %v136_v53, 0.0 }
  0x9f   :  { %v1547_v59 = vadd.f32 -1.0, %v1639_v57 }
  0xa0   :  { %1642 = vpow2.f32 %v197_v58 }
  0xa1   :  { %v242_v60 = vmul.f32 1.6732632, %v1547_v59  ;;  %v171_v61 = vpop.f32.mrf.mxu3 }
  0xa2   :  { %v172_v62 = vadd.f32 %v1966_v31, %v171_v61 }
  0xa3   :  { %v138_v63 = vpop.f32.mrf.mxu0  ;;  %v258_v0 = vsel %vm178_vm3, %v133_v41, %v242_v60 }
  0xa4   :  { %v1641_v1 = vpop.eup %1640  ;;  %v221_v2 = vmul.f32 1.442695, %v172_v62  ;;  %v139_v3 = vadd.f32 %v1966_v31, %v138_v63  ;;  %v274_v4 = vmul.f32 1.050701, %v258_v0  ;;  %vm191_vm6 = vcmp.gt.f32.partialorder %v172_v62, 0.0 }
  0xa5   :  { %v1559_v5 = vadd.f32 -1.0, %v1641_v1 }
  0xa6   :  { %v1643_v7 = vpop.eup %1642  ;;  %1644 = vpow2.f32 %v221_v2  ;;  %v199_v8 = vmul.f32 1.442695, %v139_v3  ;;  %1563 = vmatmul.msk.f32.gmra.mxu1 %vm293_vm2, %v274_v4  ;;  %vm180_vm7 = vcmp.gt.f32.partialorder %v139_v3, 0.0 }
  0xa7   :  { %v254_v9 = vmul.f32 1.6732632, %v1559_v5  ;;  %v1548_v10 = vadd.f32 -1.0, %v1643_v7 }
  0xa8   :  { %1646 = vpow2.f32 %v199_v8 }
  0xa9   :  { %v270_v11 = vsel %vm190_vm4, %v169_v49, %v254_v9  ;;  %v243_v12 = vmul.f32 1.6732632, %v1548_v10  ;;  %v174_v13 = vpop.f32.mrf.mxu3 }
  0xaa   :  { %v286_v14 = vmul.f32 1.050701, %v270_v11  ;;  %v175_v15 = vadd.f32 %v1966_v31, %v174_v13 }
  0xab   :  { %v141_v16 = vpop.f32.mrf.mxu0  ;;  %v259_v17 = vsel %vm179_vm5, %v136_v53, %v243_v12 }
  0xac   :  { %v1645_v18 = vpop.eup %1644  ;;  %v223_v19 = vmul.f32 1.442695, %v175_v15  ;;  %v142_v20 = vadd.f32 %v1966_v31, %v141_v16  ;;  %1575 = vmatmul.msk.f32.vlgmr.msrb.gmra.mxu3 %vm293_vm2, %v286_v14  ;;  %v275_v21 = vmul.f32 1.050701, %v259_v17  ;;  %vm192_vm8 = vcmp.gt.f32.partialorder %v175_v15, 0.0 }
  0xad   :  { %v1560_v22 = vadd.f32 -1.0, %v1645_v18 }
  0xae   :  { %v1647_v24 = vpop.eup %1646  ;;  %1648 = vpow2.f32 %v223_v19  ;;  %v201_v26 = vmul.f32 1.442695, %v142_v20  ;;  %1564 = vmatmul.msk.f32.gmra.mxu1 %vm293_vm2, %v275_v21  ;;  %vm181_vm9 = vcmp.gt.f32.partialorder %v142_v20, 0.0 }
  0xaf   :  { %v255_v27 = vmul.f32 1.6732632, %v1560_v22  ;;  %v1549_v28 = vadd.f32 -1.0, %v1647_v24  ;;  %v166_v24 = vadd.f32 %v1966_v31, %v1973_v39 }
  0xb0   :  { %1650 = vpow2.f32 %v201_v26 }
  0xb1   :  { %v244_v29 = vmul.f32 1.6732632, %v1549_v28  ;;  %v271_v30 = vsel %vm191_vm6, %v172_v62, %v255_v27  ;;  %v1387_v62 = vsel %vm1386_vm11, %v1952_v25, -inf  ;;  %v217_v28 = vmul.f32 1.442695, %v166_v24 }
  0xb2   :  { %v287_v32 = vmul.f32 1.050701, %v271_v30  ;;  %1388 = vmax.xlane.f32.xlu2 %v1387_v62  ;;  %vm189_vm4 = vcmp.gt.f32.partialorder %v166_v24, 0.0  ;;  %v2038_v62 = vpop.permute.xlu0 %645 }
  0xb3   :  { %v144_v34 = vpop.f32.mrf.mxu0  ;;  %v260_v35 = vsel %vm180_vm7, %v139_v3, %v244_v29 }
  0xb4   :  { %v1649_v36 = vpop.eup %1648  ;;  %v145_v37 = vadd.f32 %v1966_v31, %v144_v34  ;;  %1576 = vmatmul.msk.f32.gmra.mxu3 %vm293_vm2, %v287_v32  ;;  %v276_v38 = vmul.f32 1.050701, %v260_v35 }
  0xb5   :  { %v1561_v40 = vadd.f32 -1.0, %v1649_v36 }
  0xb6   :  { %v1651_v41 = vpop.eup %1650  ;;  %v203_v42 = vmul.f32 1.442695, %v145_v37  ;;  %1565 = vmatmul.msk.f32.gmra.mxu1 %vm293_vm2, %v276_v38  ;;  %vm182_vm10 = vcmp.gt.f32.partialorder %v145_v37, 0.0 }
  0xb7   :  { %v256_v43 = vmul.f32 1.6732632, %v1561_v40  ;;  %v1550_v44 = vadd.f32 -1.0, %v1651_v41 }
  0xb8   :  { %1652 = vpow2.f32 %v203_v42 }
  0xb9   :  { %v245_v45 = vmul.f32 1.6732632, %v1550_v44  ;;  %v272_v46 = vsel %vm192_vm8, %v175_v15, %v256_v43  ;;  %v1390_v15 = vsel %vm1386_vm11, %v1968_v33, -inf }
  0xba   :  { %v288_v47 = vmul.f32 1.050701, %v272_v46  ;;  %1391 = vmax.xlane.f32.xlu0 %v1390_v15 }
  0xbb   :  { %v147_v48 = vpop.f32.mrf.mxu0  ;;  %v261_v49 = vsel %vm181_vm9, %v142_v20, %v245_v45 }
  0xbc   :  { %v148_v50 = vadd.f32 %v1966_v31, %v147_v48  ;;  %1577 = vmatmul.msk.f32.gmra.mxu3 %vm293_vm2, %v288_v47  ;;  %v277_v51 = vmul.f32 1.050701, %v261_v49  ;;  %v654_v49 = vperm.slane %v1952_v25, 2 }
  0xbe   :  { %v1653_v52 = vpop.eup %1652  ;;  %v205_v53 = vmul.f32 1.442695, %v148_v50  ;;  %1566 = vmatmul.msk.f32.gmra.mxu1 %vm293_vm2, %v277_v51  ;;  %vm183_vm12 = vcmp.gt.f32.partialorder %v148_v50, 0.0  ;;  %659 = vperm.xlu1 %1624, %v654_v49   ;;  %v661_v51 = vperm.slane %v1952_v25, 3 }
  0xbf   :  { %v1551_v54 = vadd.f32 -1.0, %v1653_v52  ;;  %v520_v52 = vld [vmem:[%s2444_s4 + $0x8] sm:$0xff] }
  0xc0   :  { %1654 = vpow2.f32 %v205_v53  ;;  %585 = vmatpush.msra.mxu2 %v520_v52  ;;  %v689_v53 = vperm.slane %v1952_v25, 7  ;;  %1616 = vmatpush.msra.mxu3 %v520_v52 }
  0xc1   :  { %v246_v55 = vmul.f32 1.6732632, %v1551_v54  ;;  %v519_v54 = vld [vmem:[%s2444_s4] sm:$0xff] }
  0xc2   :  { %586 = vmatpush.msra.mxu2 %v519_v54  ;;  %1617 = vmatpush.msra.mxu3 %v519_v54 }
  0xc3   :  { %v150_v56 = vpop.f32.mrf.mxu0  ;;  %v262_v57 = vsel %vm182_vm10, %v145_v37, %v246_v55  ;;  %v2026_v55 = vpop.permute.xlu2 %673 }
  0xc4   :  { %v151_v58 = vadd.f32 %v1966_v31, %v150_v56  ;;  %v278_v59 = vmul.f32 1.050701, %v262_v57  ;;  %v710_v56 = vperm.slane %v1968_v33, 2  ;;  %v2032_v57 = vld [vmem:[%s2443_s3 + $0x10] ss:$0 sm:$0xff] }
  0xc6   :  { %v1655_v60 = vpop.eup %1654  ;;  %v207_v61 = vmul.f32 1.442695, %v151_v58  ;;  %1567 = vmatmul.msk.f32.gmra.mxu1 %vm293_vm2, %v278_v59  ;;  %vm184_vm13 = vcmp.gt.f32.partialorder %v151_v58, 0.0  ;;  %666 = vperm.xlu1 %1624, %v661_v51  }
  0xc7   :  { %v1552_v63 = vadd.f32 -1.0, %v1655_v60  ;;  %v731_v60 = vperm.slane %v1968_v33, 5 }
  0xc8   :  { %1656 = vpow2.f32 %v207_v61 }
  0xc9   :  { %v247_v0 = vmul.f32 1.6732632, %v1552_v63 }
  0xcb   :  { %v153_v1 = vpop.f32.mrf.mxu0  ;;  %v263_v2 = vsel %vm183_vm12, %v148_v50, %v247_v0 }
  0xcc   :  { %v154_v3 = vadd.f32 %v1966_v31, %v153_v1  ;;  %v279_v4 = vmul.f32 1.050701, %v263_v2 }
  0xce   :  { %v1657_v5 = vpop.eup %1656  ;;  %v209_v6 = vmul.f32 1.442695, %v154_v3  ;;  %1568 = vmatmul.msk.f32.gmra.mxu1 %vm293_vm2, %v279_v4  ;;  %vm185_vm14 = vcmp.gt.f32.partialorder %v154_v3, 0.0  ;;  %694 = vperm.xlu1 %1624, %v689_v53  }
  0xcf   :  { %v1553_v7 = vadd.f32 -1.0, %v1657_v5 }
  0xd0   :  { %1658 = vpow2.f32 %v209_v6 }
  0xd1   :  { %v248_v8 = vmul.f32 1.6732632, %v1553_v7 }
  0xd3   :  { %v156_v9 = vpop.f32.mrf.mxu0  ;;  %v264_v10 = vsel %vm184_vm13, %v151_v58, %v248_v8  ;;  %v2034_v58 = vpop.permute.xlu2 %680 }
  0xd4   :  { %v157_v11 = vadd.f32 %v1966_v31, %v156_v9  ;;  %v280_v12 = vmul.f32 1.050701, %v264_v10 }
  0xd6   :  { %v1659_v13 = vpop.eup %1658  ;;  %v211_v14 = vmul.f32 1.442695, %v157_v11  ;;  %1569 = vmatmul.msk.f32.gmra.mxu1 %vm293_vm2, %v280_v12  ;;  %vm186_vm15 = vcmp.gt.f32.partialorder %v157_v11, 0.0  ;;  %715 = vperm.xlu1 %1624, %v710_v56  }
  0xd7   :  { %v1554_v16 = vadd.f32 -1.0, %v1659_v13 }
  0xd8   :  { %1660 = vpow2.f32 %v211_v14 }
  0xd9   :  { %v249_v17 = vmul.f32 1.6732632, %v1554_v16 }
  0xdb   :  { %v159_v18 = vpop.f32.mrf.mxu0  ;;  %v265_v19 = vsel %vm185_vm14, %v154_v3, %v249_v17  ;;  %v2040_v0 = vpop.permute.xlu2 %701 }
  0xdc   :  { %v160_v20 = vadd.f32 %v1966_v31, %v159_v18  ;;  %v281_v21 = vmul.f32 1.050701, %v265_v19  ;;  %v2043_v3 = vpop.permute.xlu0 %652 }
  0xde   :  { %v1661_v22 = vpop.eup %1660  ;;  %v213_v23 = vmul.f32 1.442695, %v160_v20  ;;  %1570 = vmatmul.msk.f32.gmra.mxu1 %vm293_vm2, %v281_v21  ;;  %vm187_vm1 = vcmp.gt.f32.partialorder %v160_v20, 0.0  ;;  %736 = vperm.xlu1 %1624, %v731_v60  }
  0xdf   :  { %v1555_v26 = vadd.f32 -1.0, %v1661_v22 }
  0xe0   :  { %1662 = vpow2.f32 %v213_v23 }
  0xe1   :  { %v250_v27 = vmul.f32 1.6732632, %v1555_v26  ;;  %1664 = vpow2.f32 %v217_v28 }
  0xe3   :  { %v162_v29 = vpop.f32.mrf.mxu0  ;;  %v266_v30 = vsel %vm186_vm15, %v157_v11, %v250_v27  ;;  %v2045_v8 = vpop.permute.xlu2 %722 }
  0xe4   :  { %v163_v32 = vadd.f32 %v1966_v31, %v162_v29  ;;  %v282_v34 = vmul.f32 1.050701, %v266_v30  ;;  %v2048_v13 = vpop.permute.xlu0 %687 }
  0xe6   :  { %v1663_v35 = vpop.eup %1662  ;;  %v215_v36 = vmul.f32 1.442695, %v163_v32  ;;  %1571 = vmatmul.msk.f32.gmra.mxu1 %vm293_vm2, %v282_v34  ;;  %vm188_vm3 = vcmp.gt.f32.partialorder %v163_v32, 0.0 }
  0xe7   :  { %v1556_v37 = vadd.f32 -1.0, %v1663_v35  ;;  %v1665_v41 = vpop.eup %1664 }
  0xe8   :  { %1666 = vpow2.f32 %v215_v36  ;;  %v1558_v44 = vadd.f32 -1.0, %v1665_v41 }
  0xe9   :  { %v251_v38 = vmul.f32 1.6732632, %v1556_v37 }
  0xea   :  { %v253_v47 = vmul.f32 1.6732632, %v1558_v44 }
  0xeb   :  { %v267_v39 = vsel %vm187_vm1, %v160_v20, %v251_v38  ;;  %v2052_v21 = vpop.permute.xlu2 %743 }
  0xec   :  { %v283_v40 = vmul.f32 1.050701, %v267_v39  ;;  %v269_v48 = vsel %vm189_vm4, %v166_v24, %v253_v47  ;;  %v2055_v27 = vpop.permute.xlu0 %708 }
  0xed   :  { %v285_v50 = vmul.f32 1.050701, %v269_v48 }
  0xee   :  { %v1667_v42 = vpop.eup %1666  ;;  %1572 = vmatmul.msk.f32.gmra.mxu1 %vm293_vm2, %v283_v40 }
  0xef   :  { %v1557_v43 = vadd.f32 -1.0, %v1667_v42 }
  0xf1   :  { %v252_v45 = vmul.f32 1.6732632, %v1557_v43 }
  0xf3   :  { %v268_v31 = vsel %vm188_vm3, %v163_v32, %v252_v45 }
  0xf4   :  { %v284_v46 = vmul.f32 1.050701, %v268_v31  ;;  %v2064_v45 = vpop.permute.xlu0 %729 }
  0xf6   :  { %1573 = vmatmul.msk.f32.gmra.mxu1 %vm293_vm2, %v284_v46 }
  0xfe   :  { %1574 = vmatmul.msk.f32.gmra.mxu1 %vm293_vm2, %v285_v50 }
 0x11b   :  { %v359_v59 = vpop.f32.mrf.mxu1 }
 0x11c   :  { %v360_v61 = vadd.f32 %v2032_v57, %v359_v59 }
 0x11e   :  { %v423_v63 = vmul.f32 1.442695, %v360_v61  ;;  %vm407_vm5 = vcmp.gt.f32.partialorder %v360_v61, 0.0 }
 0x120   :  { %1668 = vpow2.f32 %v423_v63 }
 0x123   :  { %v362_v1 = vpop.f32.mrf.mxu1 }
 0x124   :  { %v363_v2 = vadd.f32 %v2032_v57, %v362_v1 }
 0x125   :  { %v2059_v41 = vpop.xlane.xlu2 %1388 }
 0x126   :  { %v1669_v4 = vpop.eup %1668  ;;  %v425_v5 = vmul.f32 1.442695, %v363_v2  ;;  %vm408_vm6 = vcmp.gt.f32.partialorder %v363_v2, 0.0  ;;  %v1393_v44 = vsub.f32 %v1952_v25, %v2059_v41 }
 0x127   :  { %v1578_v6 = vadd.f32 -1.0, %v1669_v4 }
 0x128   :  { %1670 = vpow2.f32 %v425_v5  ;;  %v1395_v48 = vmul.f32 1.442695, %v1393_v44 }
 0x129   :  { %v471_v7 = vmul.f32 1.6732632, %v1578_v6 }
 0x12b   :  { %v365_v9 = vpop.f32.mrf.mxu1  ;;  %v487_v10 = vsel %vm407_vm5, %v360_v61, %v471_v7 }
 0x12c   :  { %v366_v11 = vadd.f32 %v2032_v57, %v365_v9  ;;  %v503_v12 = vmul.f32 1.050701, %v487_v10 }
 0x12e   :  { %v1671_v14 = vpop.eup %1670  ;;  %v427_v15 = vmul.f32 1.442695, %v366_v11  ;;  %1594 = vmatmul.msk.f32.vlgmr.msra.gmra.mxu2 %vm293_vm2, %v503_v12  ;;  %vm409_vm7 = vcmp.gt.f32.partialorder %v366_v11, 0.0 }
 0x12f   :  { %v1579_v16 = vadd.f32 -1.0, %v1671_v14  ;;  %v398_v17 = vpop.f32.mrf.mxu3 }
 0x130   :  { %1672 = vpow2.f32 %v427_v15  ;;  %v399_v18 = vadd.f32 %v2032_v57, %v398_v17 }
 0x131   :  { %v472_v19 = vmul.f32 1.6732632, %v1579_v16 }
 0x132   :  { %v449_v20 = vmul.f32 1.442695, %v399_v18  ;;  %vm420_vm8 = vcmp.gt.f32.partialorder %v399_v18, 0.0 }
 0x133   :  { %v368_v22 = vpop.f32.mrf.mxu1  ;;  %v488_v23 = vsel %vm408_vm6, %v363_v2, %v472_v19  ;;  %v2070_v2 = vpop.permute.xlu0 %750 }
 0x134   :  { %1674 = vpow2.f32 %v449_v20  ;;  %v369_v24 = vadd.f32 %v2032_v57, %v368_v22  ;;  %v504_v26 = vmul.f32 1.050701, %v488_v23 }
 0x136   :  { %v1673_v28 = vpop.eup %1672  ;;  %v429_v29 = vmul.f32 1.442695, %v369_v24  ;;  %1595 = vmatmul.msk.f32.gmra.mxu2 %vm293_vm2, %v504_v26  ;;  %vm410_vm9 = vcmp.gt.f32.partialorder %v369_v24, 0.0 }
 0x137   :  { %v1580_v30 = vadd.f32 -1.0, %v1673_v28  ;;  %v401_v32 = vpop.f32.mrf.mxu3 }
 0x138   :  { %1676 = vpow2.f32 %v429_v29  ;;  %v402_v34 = vadd.f32 %v2032_v57, %v401_v32 }
 0x139   :  { %v473_v35 = vmul.f32 1.6732632, %v1580_v30 }
 0x13a   :  { %v1675_v36 = vpop.eup %1674  ;;  %v451_v37 = vmul.f32 1.442695, %v402_v34  ;;  %vm421_vm10 = vcmp.gt.f32.partialorder %v402_v34, 0.0 }
 0x13b   :  { %v1591_v38 = vadd.f32 -1.0, %v1675_v36  ;;  %v371_v39 = vpop.f32.mrf.mxu1  ;;  %v489_v40 = vsel %vm409_vm7, %v366_v11, %v473_v35  ;;  %v2076_v22 = vpop.xlane.xlu0 %1391  ;;  %vm768_vm7 = vcmask 7168  }
 0x13c   :  { %1678 = vpow2.f32 %v451_v37  ;;  %v372_v42 = vadd.f32 %v2032_v57, %v371_v39  ;;  %v505_v43 = vmul.f32 1.050701, %v489_v40 }
 0x13d   :  { %v484_v31 = vmul.f32 1.6732632, %v1591_v38 }
 0x13e   :  { %v1677_v46 = vpop.eup %1676  ;;  %v431_v47 = vmul.f32 1.442695, %v372_v42  ;;  %1596 = vmatmul.msk.f32.gmra.mxu2 %vm293_vm2, %v505_v43  ;;  %vm411_vm12 = vcmp.gt.f32.partialorder %v372_v42, 0.0 }
 0x13f   :  { %v500_v49 = vsel %vm420_vm8, %v399_v18, %v484_v31  ;;  %v1581_v50 = vadd.f32 -1.0, %v1677_v46  ;;  %v404_v51 = vpop.f32.mrf.mxu3  ;;  %vm1363_vm8 = vcmask 1042434  }
 0x140   :  { %v516_v52 = vmul.f32 1.050701, %v500_v49  ;;  %1680 = vpow2.f32 %v431_v47  ;;  %v405_v53 = vadd.f32 %v2032_v57, %v404_v51 }
 0x141   :  { %v474_v54 = vmul.f32 1.6732632, %v1581_v50  ;;  %1682 = vpow2.f32 %v1395_v48 }
 0x142   :  { %v1679_v56 = vpop.eup %1678  ;;  %v453_v25 = vmul.f32 1.442695, %v405_v53  ;;  %1607 = vmatmul.msk.f32.vlgmr.msra.gmra.mxu3 %vm293_vm2, %v516_v52  ;;  %vm422_vm13 = vcmp.gt.f32.partialorder %v405_v53, 0.0 }
 0x143   :  { %v1592_v59 = vadd.f32 -1.0, %v1679_v56  ;;  %v374_v60 = vpop.f32.mrf.mxu1  ;;  %v490_v61 = vsel %vm410_vm9, %v369_v24, %v474_v54  ;;  %v1394_v24 = vsub.f32 %v1968_v33, %v2076_v22  ;;  %vm1365_vm9 = vcmask 1043459  }
 0x144   :  { %1684 = vpow2.f32 %v453_v25  ;;  %v375_v63 = vadd.f32 %v2032_v57, %v374_v60  ;;  %v506_v1 = vmul.f32 1.050701, %v490_v61 }
 0x145   :  { %v485_v4 = vmul.f32 1.6732632, %v1592_v59  ;;  %v1397_v32 = vmul.f32 1.442695, %v1394_v24 }
 0x146   :  { %v1681_v5 = vpop.eup %1680  ;;  %v433_v6 = vmul.f32 1.442695, %v375_v63  ;;  %1597 = vmatmul.msk.f32.gmra.mxu2 %vm293_vm2, %v506_v1  ;;  %vm412_vm14 = vcmp.gt.f32.partialorder %v375_v63, 0.0 }
 0x147   :  { %v1683_v7 = vpop.eup %1682  ;;  %v1582_v9 = vadd.f32 -1.0, %v1681_v5  ;;  %v501_v10 = vsel %vm421_vm10, %v402_v34, %v485_v4  ;;  %vm1367_vm10 = vcmask 1044484  }
 0x148   :  { %1686 = vpow2.f32 %v433_v6  ;;  %v517_v11 = vmul.f32 1.050701, %v501_v10  ;;  %v1399_v12 = vsel %vm1386_vm11, %v1683_v7, 0.0 }
 0x149   :  { %v475_v14 = vmul.f32 1.6732632, %v1582_v9  ;;  %1400 = vadd.xlane.f32.xlu1 %v1399_v12 }
 0x14a   :  { %v1685_v15 = vpop.eup %1684  ;;  %1608 = vmatmul.msk.f32.gmra.mxu3 %vm293_vm2, %v517_v11 }
 0x14b   :  { %v1593_v16 = vadd.f32 -1.0, %v1685_v15  ;;  %v377_v17 = vpop.f32.mrf.mxu1  ;;  %v491_v18 = vsel %vm411_vm12, %v372_v42, %v475_v14  ;;  %vm1369_vm12 = vcmask 1045509  }
 0x14c   :  { %v378_v19 = vadd.f32 %v2032_v57, %v377_v17  ;;  %v507_v20 = vmul.f32 1.050701, %v491_v18 }
 0x14d   :  { %v486_v23 = vmul.f32 1.6732632, %v1593_v16 }
 0x14e   :  { %v1687_v26 = vpop.eup %1686  ;;  %v435_v28 = vmul.f32 1.442695, %v378_v19  ;;  %1598 = vmatmul.msk.f32.gmra.mxu2 %vm293_vm2, %v507_v20  ;;  %vm413_vm15 = vcmp.gt.f32.partialorder %v378_v19, 0.0 }
 0x14f   :  { %v1583_v29 = vadd.f32 -1.0, %v1687_v26  ;;  %v502_v30 = vsel %vm422_vm13, %v405_v53, %v486_v23  ;;  %vm1371_vm13 = vcmask 1046534  }
 0x150   :  { %1688 = vpow2.f32 %v435_v28  ;;  %v518_v34 = vmul.f32 1.050701, %v502_v30 }
 0x151   :  { %v476_v35 = vmul.f32 1.6732632, %v1583_v29  ;;  %1690 = vpow2.f32 %v1397_v32 }
 0x152   :  { %1609 = vmatmul.msk.f32.gmra.mxu3 %vm293_vm2, %v518_v34 }
 0x153   :  { %v380_v36 = vpop.f32.mrf.mxu1  ;;  %v492_v37 = vsel %vm412_vm14, %v375_v63, %v476_v35  ;;  %vm1373_vm14 = vcmask 1047559  }
 0x154   :  { %v381_v38 = vadd.f32 %v2032_v57, %v380_v36  ;;  %v508_v39 = vmul.f32 1.050701, %v492_v37 }
 0x156   :  { %v1689_v33 = vpop.eup %1688  ;;  %v437_v40 = vmul.f32 1.442695, %v381_v38  ;;  %1599 = vmatmul.msk.f32.gmra.mxu2 %vm293_vm2, %v508_v39  ;;  %vm414_vm1 = vcmp.gt.f32.partialorder %v381_v38, 0.0 }
 0x157   :  { %v1691_v42 = vpop.eup %1690  ;;  %v1584_v43 = vadd.f32 -1.0, %v1689_v33 }
 0x158   :  { %1692 = vpow2.f32 %v437_v40  ;;  %v1402_v44 = vsel %vm1386_vm11, %v1691_v42, 0.0 }
 0x159   :  { %v477_v31 = vmul.f32 1.6732632, %v1584_v43  ;;  %1403 = vadd.xlane.f32.xlu2 %v1402_v44  ;;  %v2100_v44 = vld [vmem:[%s2444_s4 + $0x10] ss:$0 sm:$0xff] }
 0x15b   :  { %v383_v46 = vpop.f32.mrf.mxu1  ;;  %v493_v47 = vsel %vm413_vm15, %v378_v19, %v477_v31 }
 0x15c   :  { %v384_v48 = vadd.f32 %v2032_v57, %v383_v46  ;;  %v509_v49 = vmul.f32 1.050701, %v493_v47 }
 0x15e   :  { %v1693_v50 = vpop.eup %1692  ;;  %v439_v51 = vmul.f32 1.442695, %v384_v48  ;;  %1600 = vmatmul.msk.f32.gmra.mxu2 %vm293_vm2, %v509_v49  ;;  %vm415_vm11 = vcmp.gt.f32.partialorder %v384_v48, 0.0 }
 0x15f   :  { %v1585_v52 = vadd.f32 -1.0, %v1693_v50 }
 0x160   :  { %1694 = vpow2.f32 %v439_v51 }
 0x161   :  { %v478_v53 = vmul.f32 1.6732632, %v1585_v52 }
 0x163   :  { %v386_v54 = vpop.f32.mrf.mxu1  ;;  %v494_v56 = vsel %vm414_vm1, %v381_v38, %v478_v53 }
 0x164   :  { %v387_v25 = vadd.f32 %v2032_v57, %v386_v54  ;;  %v510_v59 = vmul.f32 1.050701, %v494_v56 }
 0x166   :  { %v1695_v60 = vpop.eup %1694  ;;  %v441_v61 = vmul.f32 1.442695, %v387_v25  ;;  %1601 = vmatmul.msk.f32.gmra.mxu2 %vm293_vm2, %v510_v59  ;;  %vm416_vm3 = vcmp.gt.f32.partialorder %v387_v25, 0.0 }
 0x167   :  { %v1586_v63 = vadd.f32 -1.0, %v1695_v60 }
 0x168   :  { %1696 = vpow2.f32 %v441_v61 }
 0x169   :  { %v479_v1 = vmul.f32 1.6732632, %v1586_v63 }
 0x16b   :  { %v389_v4 = vpop.f32.mrf.mxu1  ;;  %v495_v5 = vsel %vm415_vm11, %v384_v48, %v479_v1 }
 0x16c   :  { %v390_v6 = vadd.f32 %v2032_v57, %v389_v4  ;;  %v511_v7 = vmul.f32 1.050701, %v495_v5 }
 0x16e   :  { %v1697_v9 = vpop.eup %1696  ;;  %v443_v10 = vmul.f32 1.442695, %v390_v6  ;;  %1602 = vmatmul.msk.f32.gmra.mxu2 %vm293_vm2, %v511_v7  ;;  %vm417_vm4 = vcmp.gt.f32.partialorder %v390_v6, 0.0 }
 0x16f   :  { %v1587_v11 = vadd.f32 -1.0, %v1697_v9 }
 0x170   :  { %1698 = vpow2.f32 %v443_v10 }
 0x171   :  { %v480_v12 = vmul.f32 1.6732632, %v1587_v11 }
 0x173   :  { %v392_v14 = vpop.f32.mrf.mxu1  ;;  %v496_v15 = vsel %vm416_vm3, %v387_v25, %v480_v12 }
 0x174   :  { %v393_v16 = vadd.f32 %v2032_v57, %v392_v14  ;;  %v512_v17 = vmul.f32 1.050701, %v496_v15 }
 0x176   :  { %v1699_v18 = vpop.eup %1698  ;;  %v445_v19 = vmul.f32 1.442695, %v393_v16  ;;  %1603 = vmatmul.msk.f32.gmra.mxu2 %vm293_vm2, %v512_v17  ;;  %vm418_vm5 = vcmp.gt.f32.partialorder %v393_v16, 0.0 }
 0x177   :  { %v1588_v20 = vadd.f32 -1.0, %v1699_v18 }
 0x178   :  { %1700 = vpow2.f32 %v445_v19 }
 0x179   :  { %v481_v23 = vmul.f32 1.6732632, %v1588_v20 }
 0x17b   :  { %v395_v24 = vpop.f32.mrf.mxu1  ;;  %v497_v26 = vsel %vm417_vm4, %v390_v6, %v481_v23 }
 0x17c   :  { %v396_v28 = vadd.f32 %v2032_v57, %v395_v24  ;;  %v513_v29 = vmul.f32 1.050701, %v497_v26  ;;  %v660_v57 = vpop.permute.xlu1 %659 }
 0x17e   :  { %v1701_v30 = vpop.eup %1700  ;;  %v447_v32 = vmul.f32 1.442695, %v396_v28  ;;  %1604 = vmatmul.msk.f32.gmra.mxu2 %vm293_vm2, %v513_v29  ;;  %vm419_vm6 = vcmp.gt.f32.partialorder %v396_v28, 0.0 }
 0x17f   :  { %v1589_v34 = vadd.f32 -1.0, %v1701_v30 }
 0x180   :  { %1702 = vpow2.f32 %v447_v32 }
 0x181   :  { %v482_v35 = vmul.f32 1.6732632, %v1589_v34 }
 0x183   :  { %v498_v36 = vsel %vm418_vm5, %v393_v16, %v482_v35 }
 0x184   :  { %v514_v37 = vmul.f32 1.050701, %v498_v36  ;;  %v667_v43 = vpop.permute.xlu1 %666 }
 0x186   :  { %v1703_v38 = vpop.eup %1702  ;;  %1605 = vmatmul.msk.f32.gmra.mxu2 %vm293_vm2, %v514_v37 }
 0x187   :  { %v1590_v39 = vadd.f32 -1.0, %v1703_v38 }
 0x189   :  { %v483_v33 = vmul.f32 1.6732632, %v1590_v39 }
 0x18b   :  { %v499_v40 = vsel %vm419_vm6, %v396_v28, %v483_v33 }
 0x18c   :  { %v515_v42 = vmul.f32 1.050701, %v499_v40  ;;  %v2102_v46 = vpop.permute.xlu1 %694 }
 0x18e   :  { %1606 = vmatmul.msk.f32.gmra.mxu2 %vm293_vm2, %v515_v42  ;;  %vm1361_vm2 = vcmask 1041409  }
 0x194   :  { %v2111_v56 = vpop.permute.xlu1 %715 }
 0x19c   :  { %v737_v12 = vpop.permute.xlu1 %736 }
 0x1b1   :  { %v588_v31 = vpop.f32.mrf.mxu2 }
 0x1b2   :  { %v589_v47 = vadd.f32 %v2100_v44, %v588_v31 }
 0x1b4   :  { %v2106_v48 = vadd.f32 %v2038_v62, %v589_v47 }
 0x1b6   :  { %v769_v49 = vsel %vm768_vm7, %v2106_v48, -inf }
 0x1b7   :  { %v770_v50 = vrot.slane %v769_v49, 4 }
 0x1b9   :  { %v771_v51 = vmax.f32 %v769_v49, %v770_v50  ;;  %v591_v52 = vpop.f32.mrf.mxu2 }
 0x1ba   :  { %v592_v53 = vadd.f32 %v2100_v44, %v591_v52 }
 0x1bb   :  { %v772_v54 = vrot.slane %v771_v51, 2 }
 0x1bc   :  { %v2114_v25 = vadd.f32 %v2043_v3, %v592_v53 }
 0x1bd   :  { %v773_v59 = vmax.f32 %v771_v51, %v772_v54 }
 0x1be   :  { %v776_v60 = vsel %vm768_vm7, %v2114_v25, -inf }
 0x1bf   :  { %v774_v62 = vrot.slane %v773_v59, 1  ;;  %v777_v61 = vrot.slane %v776_v60, 4 }
 0x1c1   :  { %v2118_v63 = vmax.f32 %v773_v59, %v774_v62  ;;  %v778_v1 = vmax.f32 %v776_v60, %v777_v61  ;;  %v594_v4 = vpop.f32.mrf.mxu2 }
 0x1c2   :  { %v595_v5 = vadd.f32 %v2100_v44, %v594_v4 }
 0x1c3   :  { %v881_v6 = vsub.f32 %v2106_v48, %v2118_v63  ;;  %v779_v7 = vrot.slane %v778_v1, 2 }
 0x1c4   :  { %v2123_v9 = vadd.f32 %v660_v57, %v595_v5 }
 0x1c5   :  { %v897_v3 = vmul.f32 1.442695, %v881_v6  ;;  %v780_v10 = vmax.f32 %v778_v1, %v779_v7  ;;  %v627_v11 = vpop.f32.mrf.mxu3 }
 0x1c6   :  { %v783_v14 = vsel %vm768_vm7, %v2123_v9, -inf  ;;  %v628_v15 = vadd.f32 %v2100_v44, %v627_v11 }
 0x1c7   :  { %1704 = vpow2.f32 %v897_v3  ;;  %v781_v16 = vrot.slane %v780_v10, 1  ;;  %v784_v17 = vrot.slane %v783_v14, 4 }
 0x1c8   :  { %v2128_v18 = vadd.f32 %v737_v12, %v628_v15 }
 0x1c9   :  { %v2130_v19 = vmax.f32 %v780_v10, %v781_v16  ;;  %v785_v20 = vmax.f32 %v783_v14, %v784_v17  ;;  %v597_v23 = vpop.f32.mrf.mxu2 }
 0x1ca   :  { %v860_v24 = vsel %vm768_vm7, %v2128_v18, -inf  ;;  %v598_v26 = vadd.f32 %v2100_v44, %v597_v23 }
 0x1cb   :  { %v882_v28 = vsub.f32 %v2114_v25, %v2130_v19  ;;  %v786_v29 = vrot.slane %v785_v20, 2  ;;  %v861_v30 = vrot.slane %v860_v24, 4 }
 0x1cc   :  { %v2137_v32 = vadd.f32 %v667_v43, %v598_v26 }
 0x1cd   :  { %v1705_v34 = vpop.eup %1704  ;;  %v899_v35 = vmul.f32 1.442695, %v882_v28  ;;  %v787_v36 = vmax.f32 %v785_v20, %v786_v29  ;;  %v630_v37 = vpop.f32.mrf.mxu3  ;;  %v862_v57 = vmax.f32 %v860_v24, %v861_v30 }
 0x1ce   :  { %v929_v38 = vsel %vm768_vm7, %v1705_v34, 0.0  ;;  %v790_v39 = vsel %vm768_vm7, %v2137_v32, -inf  ;;  %v631_v33 = vadd.f32 %v2100_v44, %v630_v37 }
 0x1cf   :  { %v930_v40 = vrot.slane %v929_v38, 4  ;;  %1706 = vpow2.f32 %v899_v35  ;;  %v788_v42 = vrot.slane %v787_v36, 1  ;;  %v791_v31 = vrot.slane %v790_v39, 4 }
 0x1d0   :  { %v2144_v47 = vadd.f32 %v2052_v21, %v631_v33  ;;  %v863_v60 = vrot.slane %v862_v57, 2 }
 0x1d1   :  { %v931_v43 = vadd.f32 %v930_v40, %v929_v38  ;;  %v2146_v49 = vmax.f32 %v787_v36, %v788_v42  ;;  %v600_v50 = vpop.f32.mrf.mxu2  ;;  %v792_v51 = vmax.f32 %v790_v39, %v791_v31 }
 0x1d2   :  { %v601_v52 = vadd.f32 %v2100_v44, %v600_v50  ;;  %v867_v59 = vsel %vm768_vm7, %v2144_v47, -inf  ;;  %v864_v14 = vmax.f32 %v862_v57, %v863_v60 }
 0x1d3   :  { %v932_v53 = vrot.slane %v931_v43, 2  ;;  %v883_v54 = vsub.f32 %v2123_v9, %v2146_v49  ;;  %v793_v62 = vrot.slane %v792_v51, 2  ;;  %v868_v7 = vrot.slane %v867_v59, 4 }
 0x1d4   :  { %v2154_v61 = vadd.f32 %v2026_v55, %v601_v52  ;;  %v865_v34 = vrot.slane %v864_v14, 1 }
 0x1d5   :  { %v1707_v21 = vpop.eup %1706  ;;  %v933_v1 = vadd.f32 %v932_v53, %v931_v43  ;;  %v901_v4 = vmul.f32 1.442695, %v883_v54  ;;  %v794_v6 = vmax.f32 %v792_v51, %v793_v62  ;;  %v633_v10 = vpop.f32.mrf.mxu3  ;;  %v869_v26 = vmax.f32 %v867_v59, %v868_v7 }
 0x1d6   :  { %v936_v5 = vsel %vm768_vm7, %v1707_v21, 0.0  ;;  %v797_v3 = vsel %vm768_vm7, %v2154_v61, -inf  ;;  %v634_v20 = vadd.f32 %v2100_v44, %v633_v10  ;;  %v1875_v43 = vmov 0  }
 0x1d7   :  { %v934_v11 = vrot.slane %v933_v1, 1  ;;  %v937_v12 = vrot.slane %v936_v5, 4  ;;  %1708 = vpow2.f32 %v901_v4  ;;  %v795_v15 = vrot.slane %v794_v6, 1  ;;  %1626 = vset.pattern.permute.xlu1 %v1875_v43  ;;  %1627 = vset.pattern.permute.xlu2 %v1875_v43 }
 0x1d8   :  { %v798_v16 = vrot.slane %v797_v3, 4  ;;  %v2166_v39 = vadd.f32 %v2070_v2, %v634_v20  ;;  %v870_v57 = vrot.slane %v869_v26, 2  ;;  %1628 = vset.pattern.permute.xlu0 %v1875_v43  ;;  %v2174_v60 = vmax.f32 %v864_v14, %v865_v34 }
 0x1d9   :  { %v935_v17 = vadd.f32 %v934_v11, %v933_v1  ;;  %v938_v55 = vadd.f32 %v937_v12, %v936_v5  ;;  %v603_v23 = vpop.f32.mrf.mxu2  ;;  %v2160_v24 = vmax.f32 %v794_v6, %v795_v15 }
 0x1da   :  { %v799_v28 = vmax.f32 %v797_v3, %v798_v16  ;;  %v604_v30 = vadd.f32 %v2100_v44, %v603_v23  ;;  %v874_v62 = vsel %vm768_vm7, %v2166_v39, -inf  ;;  %v871_v4 = vmax.f32 %v869_v26, %v870_v57 }
 0x1db   :  { %1710 = vlog2.f32 %v935_v17  ;;  %v939_v29 = vrot.slane %v938_v55, 2  ;;  %v884_v35 = vsub.f32 %v2137_v32, %v2160_v24  ;;  %v875_v11 = vrot.slane %v874_v62, 4 }
 0x1dc   :  { %v800_v36 = vrot.slane %v799_v28, 2  ;;  %v2169_v33 = vadd.f32 %v2034_v58, %v604_v30  ;;  %v894_v14 = vsub.f32 %v2128_v18, %v2174_v60  ;;  %v872_v20 = vrot.slane %v871_v4, 1 }
 0x1dd   :  { %v1709_v37 = vpop.eup %1708  ;;  %v940_v38 = vadd.f32 %v939_v29, %v938_v55  ;;  %v903_v42 = vmul.f32 1.442695, %v884_v35  ;;  %v876_v34 = vmax.f32 %v874_v62, %v875_v11 }
 0x1de   :  { %v943_v40 = vsel %vm768_vm7, %v1709_v37, 0.0  ;;  %v801_v31 = vmax.f32 %v799_v28, %v800_v36  ;;  %v804_v52 = vsel %vm768_vm7, %v2169_v33, -inf  ;;  %v923_v37 = vmul.f32 1.442695, %v894_v14 }
 0x1df   :  { %v941_v50 = vrot.slane %v940_v38, 1  ;;  %v944_v51 = vrot.slane %v943_v40, 4  ;;  %1712 = vpow2.f32 %v903_v42  ;;  %v805_v53 = vrot.slane %v804_v52, 4 }
 0x1e0   :  { %v802_v2 = vrot.slane %v801_v31, 1 }
 0x1e1   :  { %v1711_v54 = vpop.eup %1710  ;;  %v942_v58 = vadd.f32 %v941_v50, %v940_v38  ;;  %v945_v59 = vadd.f32 %v944_v51, %v943_v40  ;;  %v606_v21 = vpop.f32.mrf.mxu2  ;;  %v806_v6 = vmax.f32 %v804_v52, %v805_v53 }
 0x1e2   :  { %v1042_v1 = vmul.f32 0.6931472, %v1711_v54  ;;  %v2178_v5 = vmax.f32 %v801_v31, %v802_v2  ;;  %v607_v16 = vadd.f32 %v2100_v44, %v606_v21  ;;  %v2194_v31 = vmax.f32 %v871_v4, %v872_v20 }
 0x1e3   :  { %1714 = vlog2.f32 %v942_v58  ;;  %v946_v7 = vrot.slane %v945_v59, 2  ;;  %v807_v15 = vrot.slane %v806_v6, 2  ;;  %v877_v2 = vrot.slane %v876_v34, 2 }
 0x1e4   :  { %v2181_v3 = vadd.f32 %v1042_v1, %v2118_v63  ;;  %v885_v10 = vsub.f32 %v2154_v61, %v2178_v5  ;;  %v2192_v40 = vadd.f32 %v2048_v13, %v607_v16  ;;  %v895_v62 = vsub.f32 %v2144_v47, %v2194_v31 }
 0x1e5   :  { %v947_v12 = vadd.f32 %v946_v7, %v945_v59  ;;  %v1713_v17 = vpop.eup %1712  ;;  %v808_v28 = vmax.f32 %v806_v6, %v807_v15  ;;  %v878_v11 = vmax.f32 %v876_v34, %v877_v2  ;;  %v1401_v2 = vpop.xlane.xlu1 %1400 }
 0x1e6   :  { %v1089_v55 = vsub.f32 %v2106_v48, %v2181_v3  ;;  %v905_v23 = vmul.f32 1.442695, %v885_v10  ;;  %v950_v63 = vsel %vm768_vm7, %v1713_v17, 0.0  ;;  %v811_v50 = vsel %vm768_vm7, %v2192_v40, -inf }
 0x1e7   :  { %v948_v26 = vrot.slane %v947_v12, 1  ;;  %v951_v30 = vrot.slane %v950_v63, 4  ;;  %v809_v38 = vrot.slane %v808_v28, 1  ;;  %v812_v53 = vrot.slane %v811_v50, 4 }
 0x1e8   :  { %v1105_v29 = vmul.f32 1.442695, %v1089_v55  ;;  %1716 = vpow2.f32 %v905_v23  ;;  %v925_v20 = vmul.f32 1.442695, %v895_v62  ;;  %v879_v34 = vrot.slane %v878_v11, 1 }
 0x1e9   :  { %v1715_v35 = vpop.eup %1714  ;;  %v949_v36 = vadd.f32 %v948_v26, %v947_v12  ;;  %v609_v42 = vpop.f32.mrf.mxu2  ;;  %v952_v57 = vadd.f32 %v951_v30, %v950_v63  ;;  %v2196_v43 = vmax.f32 %v808_v28, %v809_v38 }
 0x1ea   :  { %1718 = vpow2.f32 %v1105_v29  ;;  %v1044_v48 = vmul.f32 0.6931472, %v1715_v35  ;;  %v610_v4 = vadd.f32 %v2100_v44, %v609_v42 }
 0x1eb   :  { %1720 = vlog2.f32 %v949_v36  ;;  %v953_v52 = vrot.slane %v952_v57, 2  ;;  %v886_v13 = vsub.f32 %v2169_v33, %v2196_v43 }
 0x1ec   :  { %v2201_v51 = vadd.f32 %v1044_v48, %v2130_v19  ;;  %1722 = vpow2.f32 %v923_v37  ;;  %v813_v19 = vmax.f32 %v811_v50, %v812_v53 }
 0x1ed   :  { %v954_v59 = vadd.f32 %v953_v52, %v952_v57  ;;  %v907_v1 = vmul.f32 1.442695, %v886_v13 }
 0x1ee   :  { %v1717_v54 = vpop.eup %1716  ;;  %v1090_v58 = vsub.f32 %v2114_v25, %v2201_v51  ;;  %v814_v15 = vrot.slane %v813_v19, 2  ;;  %v2212_v25 = vadd.f32 %v2102_v46, %v610_v4 }
 0x1ef   :  { %v957_v21 = vsel %vm768_vm7, %v1717_v54, 0.0  ;;  %v955_v10 = vrot.slane %v954_v59, 1  ;;  %1724 = vpow2.f32 %v907_v1 }
 0x1f0   :  { %v1719_v6 = vpop.eup %1718  ;;  %v1107_v7 = vmul.f32 1.442695, %v1090_v58  ;;  %v958_v14 = vrot.slane %v957_v21, 4  ;;  %v815_v63 = vmax.f32 %v813_v19, %v814_v15  ;;  %v818_v28 = vsel %vm768_vm7, %v2212_v25, -inf }
 0x1f1   :  { %v1721_v12 = vpop.eup %1720  ;;  %v612_v16 = vpop.f32.mrf.mxu2  ;;  %1139 = vperm.xlu1 %1626, %v1719_v6   ;;  %v956_v55 = vadd.f32 %v955_v10, %v954_v59  ;;  %v819_v35 = vrot.slane %v818_v28, 4  ;;  %v2226_v58 = vmax.f32 %v878_v11, %v879_v34 }
 0x1f2   :  { %1726 = vpow2.f32 %v1107_v7  ;;  %v1046_v17 = vmul.f32 0.6931472, %v1721_v12  ;;  %v1723_v23 = vpop.eup %1722  ;;  %v959_v26 = vadd.f32 %v958_v14, %v957_v21  ;;  %v816_v46 = vrot.slane %v815_v63, 1 }
 0x1f3   :  { %1728 = vlog2.f32 %v956_v55  ;;  %v1020_v37 = vsel %vm768_vm7, %v1723_v23, 0.0  ;;  %v613_v38 = vadd.f32 %v2100_v44, %v612_v16  ;;  %v820_v13 = vmax.f32 %v818_v28, %v819_v35 }
 0x1f4   :  { %v2217_v29 = vadd.f32 %v1046_v17, %v2146_v49  ;;  %v960_v30 = vrot.slane %v959_v26, 2  ;;  %1730 = vpow2.f32 %v925_v20  ;;  %v2223_v57 = vmax.f32 %v815_v63, %v816_v46 }
 0x1f5   :  { %v1725_v42 = vpop.eup %1724  ;;  %v1021_v53 = vrot.slane %v1020_v37, 4  ;;  %v821_v1 = vrot.slane %v820_v13, 2  ;;  %v2231_v19 = vadd.f32 %v2040_v0, %v613_v38  ;;  %v896_v16 = vsub.f32 %v2166_v39, %v2226_v58 }
 0x1f6   :  { %v1091_v36 = vsub.f32 %v2123_v9, %v2217_v29  ;;  %v961_v48 = vadd.f32 %v960_v30, %v959_v26  ;;  %v964_v52 = vsel %vm768_vm7, %v1725_v42, 0.0  ;;  %v887_v21 = vsub.f32 %v2192_v40, %v2223_v57 }
 0x1f7   :  { %v965_v9 = vrot.slane %v964_v52, 4  ;;  %v822_v11 = vmax.f32 %v820_v13, %v821_v1  ;;  %v825_v14 = vsel %vm768_vm7, %v2231_v19, -inf  ;;  %v1022_v17 = vadd.f32 %v1021_v53, %v1020_v37 }
 0x1f8   :  { %v1727_v50 = vpop.eup %1726  ;;  %v1109_v49 = vmul.f32 1.442695, %v1091_v36  ;;  %v962_v54 = vrot.slane %v961_v48, 1  ;;  %v909_v12 = vmul.f32 1.442695, %v887_v21  ;;  %v826_v55 = vrot.slane %v825_v14, 4 }
 0x1f9   :  { %v615_v59 = vpop.f32.mrf.mxu2  ;;  %1144 = vperm.xlu1 %1626, %v1727_v50   ;;  %v1729_v62 = vpop.eup %1728  ;;  %v966_v10 = vadd.f32 %v965_v9, %v964_v52  ;;  %v823_v0 = vrot.slane %v822_v11, 1  ;;  %v927_v35 = vmul.f32 1.442695, %v896_v16  ;;  %v1023_v37 = vrot.slane %v1022_v17, 2 }
 0x1fa   :  { %1732 = vpow2.f32 %v1109_v49  ;;  %v1048_v4 = vmul.f32 0.6931472, %v1729_v62  ;;  %v963_v6 = vadd.f32 %v962_v54, %v961_v48  ;;  %v1731_v7 = vpop.eup %1730  ;;  %v827_v30 = vmax.f32 %v825_v14, %v826_v55 }
 0x1fb   :  { %1734 = vlog2.f32 %v1401_v2  ;;  %v1027_v23 = vsel %vm768_vm7, %v1731_v7, 0.0  ;;  %v967_v63 = vrot.slane %v966_v10, 2  ;;  %v2243_v28 = vmax.f32 %v822_v11, %v823_v0 }
 0x1fc   :  { %v2236_v15 = vadd.f32 %v1048_v4, %v2160_v24  ;;  %1736 = vlog2.f32 %v963_v6  ;;  %v616_v24 = vadd.f32 %v2100_v44, %v615_v59  ;;  %v828_v42 = vrot.slane %v827_v30, 2 }
 0x1fd   :  { %1738 = vpow2.f32 %v909_v12  ;;  %v888_v38 = vsub.f32 %v2212_v25, %v2243_v28  ;;  %v1028_v50 = vrot.slane %v1027_v23, 4  ;;  %v968_v2 = vadd.f32 %v967_v63, %v966_v10 }
 0x1fe   :  { %v1092_v20 = vsub.f32 %v2137_v32, %v2236_v15  ;;  %v2249_v32 = vadd.f32 %v2055_v27, %v616_v24  ;;  %v829_v53 = vmax.f32 %v827_v30, %v828_v42  ;;  %v1024_v62 = vadd.f32 %v1023_v37, %v1022_v17 }
 0x1ff   :  { %v911_v13 = vmul.f32 1.442695, %v888_v38  ;;  %v1029_v4 = vadd.f32 %v1028_v50, %v1027_v23  ;;  %v969_v12 = vrot.slane %v968_v2, 1 }
 0x200   :  { %v1733_v26 = vpop.eup %1732  ;;  %v1111_v46 = vmul.f32 1.442695, %v1092_v20  ;;  %v832_v59 = vsel %vm768_vm7, %v2249_v32, -inf  ;;  %v830_v1 = vrot.slane %v829_v53, 1  ;;  %v1025_v55 = vrot.slane %v1024_v62, 1 }
 0x201   :  { %v1735_v34 = vpop.eup %1734  ;;  %v618_v36 = vpop.f32.mrf.mxu2  ;;  %1149 = vperm.xlu1 %1626, %v1733_v26   ;;  %v833_v6 = vrot.slane %v832_v59, 4 }
 0x202   :  { %v1737_v48 = vpop.eup %1736  ;;  %1740 = vpow2.f32 %v1111_v46  ;;  %v1406_v54 = vmul.f32 0.6931472, %v1735_v34  ;;  %v619_v7 = vadd.f32 %v2100_v44, %v618_v36  ;;  %v2260_v16 = vmax.f32 %v829_v53, %v830_v1 }
 0x203   :  { %v1739_v49 = vpop.eup %1738  ;;  %v1050_v52 = vmul.f32 0.6931472, %v1737_v48  ;;  %1742 = vpow2.f32 %v927_v35  ;;  %v834_v0 = vmax.f32 %v832_v59, %v833_v6 }
 0x204   :  { %v971_v9 = vsel %vm768_vm7, %v1739_v49, 0.0  ;;  %1744 = vpow2.f32 %v911_v13  ;;  %v2263_v17 = vadd.f32 %v2111_v56, %v619_v7  ;;  %v2266_v23 = vadd.f32 %v1406_v54, %v2059_v41 }
 0x205   :  { %v2255_v21 = vadd.f32 %v1050_v52, %v2178_v5  ;;  %v972_v27 = vrot.slane %v971_v9, 4  ;;  %v889_v30 = vsub.f32 %v2231_v19, %v2260_v16  ;;  %v835_v24 = vrot.slane %v834_v0, 2 }
 0x206   :  { %v839_v34 = vsel %vm768_vm7, %v2263_v17, -inf  ;;  %v970_v56 = vadd.f32 %v969_v12, %v968_v2  ;;  %v1418_v36 = vrot.slane %v2266_v23, 6  ;;  %v1413_v49 = vrot.slane %v2266_v23, 1 }
 0x207   :  { %v1093_v10 = vsub.f32 %v2154_v61, %v2255_v21  ;;  %v973_v11 = vadd.f32 %v972_v27, %v971_v9  ;;  %v1030_v61 = vrot.slane %v1029_v4, 2  ;;  %v840_v35 = vrot.slane %v839_v34, 4 }
 0x208   :  { %v1741_v14 = vpop.eup %1740  ;;  %v913_v37 = vmul.f32 1.442695, %v889_v30  ;;  %v836_v41 = vmax.f32 %v834_v0, %v835_v24  ;;  %v2279_v27 = vadd.f32 %v1025_v55, %v1024_v62  ;;  %v1444_v12 = vsub.f32 %v2201_v51, %v1413_v49 }
 0x209   :  { %v621_v5 = vpop.f32.mrf.mxu2  ;;  %v1113_v20 = vmul.f32 1.442695, %v1093_v10  ;;  %v974_v26 = vrot.slane %v973_v11, 2  ;;  %1154 = vperm.xlu1 %1626, %v1741_v14   ;;  %v1743_v63 = vpop.eup %1742  ;;  %v841_v52 = vmax.f32 %v839_v34, %v840_v35  ;;  %v2276_v13 = vadd.f32 %v1030_v61, %v1029_v4 }
 0x20a   :  { %v622_v38 = vadd.f32 %v2100_v44, %v621_v5  ;;  %v1745_v42 = vpop.eup %1744  ;;  %v1034_v48 = vsel %vm768_vm7, %v1743_v63, 0.0  ;;  %v837_v2 = vrot.slane %v836_v41, 1  ;;  %v1419_v5 = vrot.slane %v2266_v23, 7 }
 0x20b   :  { %1746 = vpow2.f32 %v1113_v20  ;;  %v975_v46 = vadd.f32 %v974_v26, %v973_v11  ;;  %v978_v53 = vsel %vm768_vm7, %v1745_v42, 0.0  ;;  %v842_v59 = vrot.slane %v841_v52, 2 }
 0x20c   :  { %1748 = vpow2.f32 %v913_v37  ;;  %v979_v9 = vrot.slane %v978_v53, 4  ;;  %v1035_v1 = vrot.slane %v1034_v48, 4  ;;  %v2281_v6 = vmax.f32 %v836_v41, %v837_v2 }
 0x20d   :  { %v976_v50 = vrot.slane %v975_v46, 1  ;;  %1750 = vlog2.f32 %v970_v56  ;;  %v2284_v7 = vadd.f32 %v2045_v8, %v622_v38  ;;  %v843_v11 = vmax.f32 %v841_v52, %v842_v59 }
 0x20e   :  { %v980_v4 = vadd.f32 %v979_v9, %v978_v53  ;;  %v1032_v0 = vrot.slane %v2276_v13, 1  ;;  %v890_v62 = vsub.f32 %v2249_v32, %v2281_v6  ;;  %v1414_v26 = vrot.slane %v2266_v23, 2 }
 0x20f   :  { %v977_v54 = vadd.f32 %v976_v50, %v975_v46  ;;  %v846_v55 = vsel %vm768_vm7, %v2284_v7, -inf  ;;  %v844_v20 = vrot.slane %v843_v11, 1  ;;  %v2294_v51 = vadd.f32 %v1035_v1, %v1034_v48 }
 0x210   :  { %v981_v8 = vrot.slane %v980_v4, 2  ;;  %v847_v63 = vrot.slane %v846_v55, 4  ;;  %v915_v30 = vmul.f32 1.442695, %v890_v62  ;;  %v1475_v35 = vrot.slane %v1444_v12, 7 }
 0x211   :  { %v1747_v10 = vpop.eup %1746  ;;  %1752 = vlog2.f32 %v977_v54  ;;  %v624_v14 = vpop.f32.mrf.mxu2  ;;  %v2298_v37 = vmax.f32 %v843_v11, %v844_v20  ;;  %v1415_v42 = vrot.slane %v2266_v23, 3  ;;  %v1445_v52 = vsub.f32 %v2217_v29, %v1414_v26 }
 0x212   :  { %1159 = vperm.xlu1 %1626, %v1747_v10   ;;  %v1749_v61 = vpop.eup %1748  ;;  %v625_v24 = vadd.f32 %v2100_v44, %v624_v14  ;;  %v982_v56 = vadd.f32 %v981_v8, %v980_v4  ;;  %1754 = vpow2.f32 %v915_v30  ;;  %v848_v38 = vmax.f32 %v846_v55, %v847_v63 }
 0x213   :  { %v1751_v34 = vpop.eup %1750  ;;  %v985_v46 = vsel %vm768_vm7, %v1749_v61, 0.0  ;;  %v891_v48 = vsub.f32 %v2263_v17, %v2298_v37  ;;  %v1443_v54 = vsub.f32 %v2181_v3, %v2266_v23  ;;  %v1446_v14 = vsub.f32 %v2236_v15, %v1415_v42 }
 0x214   :  { %v986_v41 = vrot.slane %v985_v46, 4  ;;  %v983_v49 = vrot.slane %v982_v56, 1  ;;  %v2305_v44 = vadd.f32 %v2064_v45, %v625_v24  ;;  %v1052_v53 = vmul.f32 0.6931472, %v1751_v34 }
 0x215   :  { %v849_v9 = vrot.slane %v848_v38, 2  ;;  %v917_v10 = vmul.f32 1.442695, %v891_v48  ;;  %v1476_v45 = vsel %vm1361_vm2, %v1475_v35, %v1443_v54  ;;  %v1477_v62 = vrot.slane %v1445_v52, 6 }
 0x216   :  { %v987_v2 = vadd.f32 %v986_v41, %v985_v46  ;;  %v984_v1 = vadd.f32 %v983_v49, %v982_v56  ;;  %v853_v4 = vsel %vm768_vm7, %v2305_v44, -inf  ;;  %v2314_v3 = vadd.f32 %v1052_v53, %v2196_v43 }
 0x217   :  { %v1753_v50 = vpop.eup %1752  ;;  %v850_v11 = vmax.f32 %v848_v38, %v849_v9  ;;  %v854_v29 = vrot.slane %v853_v4, 4  ;;  %v1416_v20 = vrot.slane %v2266_v23, 4  ;;  %v1479_v34 = vrot.slane %v1446_v14, 5 }
 0x218   :  { %v1054_v59 = vmul.f32 0.6931472, %v1753_v50  ;;  %v988_v12 = vrot.slane %v987_v2, 2  ;;  %1756 = vlog2.f32 %v984_v1  ;;  %v1755_v55 = vpop.eup %1754  ;;  %v1417_v56 = vrot.slane %v2266_v23, 5 }
 0x219   :  { %1758 = vpow2.f32 %v917_v10  ;;  %v992_v63 = vsel %vm768_vm7, %v1755_v55, 0.0  ;;  %v851_v15 = vrot.slane %v850_v11, 1  ;;  %v855_v61 = vmax.f32 %v853_v4, %v854_v29 }
 0x21a   :  { %v989_v8 = vadd.f32 %v988_v12, %v987_v2  ;;  %v2318_v26 = vadd.f32 %v1054_v59, %v2223_v57  ;;  %v993_v24 = vrot.slane %v992_v63, 4  ;;  %v1478_v46 = vsel %vm1363_vm8, %v1477_v62, %v1476_v45 }
 0x21b   :  { %v2323_v43 = vmax.f32 %v850_v11, %v851_v15  ;;  %v856_v35 = vrot.slane %v855_v61, 2  ;;  %v1448_v57 = vsub.f32 %v2314_v3, %v1417_v56  ;;  %v1447_v42 = vsub.f32 %v2255_v21, %v1416_v20 }
 0x21c   :  { %v990_v30 = vrot.slane %v989_v8, 1  ;;  %v994_v38 = vadd.f32 %v993_v24, %v992_v63  ;;  %v1449_v49 = vsub.f32 %v2318_v26, %v1418_v36  ;;  %v1480_v9 = vsel %vm1365_vm9, %v1479_v34, %v1478_v46 }
 0x21d   :  { %v892_v48 = vsub.f32 %v2284_v7, %v2323_v43  ;;  %v857_v52 = vmax.f32 %v855_v61, %v856_v35  ;;  %v1481_v10 = vrot.slane %v1447_v42, 4  ;;  %v1483_v11 = vrot.slane %v1448_v57, 3 }
 0x21e   :  { %v991_v41 = vadd.f32 %v990_v30, %v989_v8  ;;  %v1757_v50 = vpop.eup %1756  ;;  %v995_v54 = vrot.slane %v994_v38, 2  ;;  %v1485_v14 = vrot.slane %v1449_v49, 2 }
 0x21f   :  { %v1759_v53 = vpop.eup %1758  ;;  %v1056_v2 = vmul.f32 0.6931472, %v1757_v50  ;;  %v919_v1 = vmul.f32 1.442695, %v892_v48  ;;  %v858_v21 = vrot.slane %v857_v52, 1  ;;  %v1482_v20 = vsel %vm1367_vm10, %v1481_v10, %v1480_v9 }
 0x220   :  { %1760 = vlog2.f32 %v991_v41  ;;  %v999_v59 = vsel %vm768_vm7, %v1759_v53, 0.0  ;;  %v996_v36 = vadd.f32 %v995_v54, %v994_v38  ;;  %v1484_v23 = vsel %vm1369_vm12, %v1483_v11, %v1482_v20  ;;  %v1404_v53 = vpop.xlane.xlu2 %1403 }
 0x221   :  { %v2335_v4 = vadd.f32 %v1056_v2, %v2243_v28  ;;  %v1000_v12 = vrot.slane %v999_v59, 4  ;;  %1762 = vpow2.f32 %v919_v1  ;;  %v2337_v29 = vmax.f32 %v857_v52, %v858_v21 }
 0x222   :  { %v997_v62 = vrot.slane %v996_v36, 1  ;;  %1764 = vlog2.f32 %v2279_v27  ;;  %v1037_v28 = vrot.slane %v2294_v51, 2  ;;  %v1486_v34 = vsel %vm1371_vm13, %v1485_v14, %v1484_v23 }
 0x223   :  { %v1450_v45 = vsub.f32 %v2335_v4, %v1419_v5  ;;  %v1001_v55 = vadd.f32 %v1000_v12, %v999_v59  ;;  %v893_v8 = vsub.f32 %v2305_v44, %v2337_v29  ;;  %v1033_v27 = vadd.f32 %v1032_v0, %v2276_v13 }
 0x224   :  { %v998_v61 = vadd.f32 %v997_v62, %v996_v36  ;;  %v1038_v38 = vadd.f32 %v1037_v28, %v2294_v51 }
 0x225   :  { %v1487_v15 = vrot.slane %v1450_v45, 1  ;;  %v1002_v30 = vrot.slane %v1001_v55, 2  ;;  %v921_v5 = vmul.f32 1.442695, %v893_v8 }
 0x226   :  { %v1761_v63 = vpop.eup %1760  ;;  %1766 = vlog2.f32 %v998_v61  ;;  %v1039_v52 = vrot.slane %v1038_v38, 1 }
 0x227   :  { %v1058_v24 = vmul.f32 0.6931472, %v1761_v63  ;;  %v1003_v56 = vadd.f32 %v1002_v30, %v1001_v55  ;;  %v1488_v46 = vsel %vm1373_vm14, %v1487_v15, %v1486_v34  ;;  %v1763_v35 = vpop.eup %1762  ;;  %1768 = vpow2.f32 %v921_v5 }
 0x228   :  { %1505 = vst.msk [vmem:[%s2446_s6] sm:$0xff] %vm768_vm7, %v1488_v46  ;;  %v1006_v42 = vsel %vm768_vm7, %v1763_v35, 0.0  ;;  %v1765_v13 = vpop.eup %1764  ;;  %1770 = vlog2.f32 %v1033_v27 }
 0x229   :  { %v2354_v41 = vadd.f32 %v1058_v24, %v2260_v16  ;;  %v1004_v57 = vrot.slane %v1003_v56, 1  ;;  %v1007_v50 = vrot.slane %v1006_v42, 4  ;;  %v1068_v9 = vmul.f32 0.6931472, %v1765_v13 }
 0x22b   :  { %v1097_v0 = vsub.f32 %v2231_v19, %v2354_v41  ;;  %v1005_v16 = vadd.f32 %v1004_v57, %v1003_v56  ;;  %v1008_v48 = vadd.f32 %v1007_v50, %v1006_v42  ;;  %v1040_v19 = vadd.f32 %v1039_v52, %v1038_v38 }
 0x22c   :  { %v1767_v2 = vpop.eup %1766  ;;  %v2367_v45 = vadd.f32 %v1068_v9, %v2174_v60 }
 0x22d   :  { %v1121_v49 = vmul.f32 1.442695, %v1097_v0  ;;  %1772 = vlog2.f32 %v1005_v16  ;;  %v1009_v54 = vrot.slane %v1008_v48, 2  ;;  %v1769_v51 = vpop.eup %1768  ;;  %v1060_v59 = vmul.f32 0.6931472, %v1767_v2 }
 0x22e   :  { %v1013_v21 = vsel %vm768_vm7, %v1769_v51, 0.0  ;;  %v1771_v10 = vpop.eup %1770  ;;  %v1102_v23 = vsub.f32 %v2128_v18, %v2367_v45 }
 0x22f   :  { %1774 = vpow2.f32 %v1121_v49  ;;  %v1010_v1 = vadd.f32 %v1009_v54, %v1008_v48  ;;  %v1082_v36 = vadd.f32 %v1060_v59, %v2281_v6  ;;  %v1014_v12 = vrot.slane %v1013_v21, 4 }
 0x230   :  { %1776 = vlog2.f32 %v1404_v53  ;;  %v1070_v8 = vmul.f32 0.6931472, %v1771_v10  ;;  %v1131_v46 = vmul.f32 1.442695, %v1102_v23 }
 0x231   :  { %v1011_v11 = vrot.slane %v1010_v1, 1  ;;  %v1098_v62 = vsub.f32 %v2249_v32, %v1082_v36  ;;  %v1015_v55 = vadd.f32 %v1014_v12, %v1013_v21  ;;  %1778 = vlog2.f32 %v1040_v19 }
 0x232   :  { %v1087_v32 = vadd.f32 %v1070_v8, %v2194_v31 }
 0x233   :  { %v1773_v14 = vpop.eup %1772  ;;  %v1012_v63 = vadd.f32 %v1011_v11, %v1010_v1  ;;  %v1123_v15 = vmul.f32 1.442695, %v1098_v62  ;;  %v1016_v61 = vrot.slane %v1015_v55, 2 }
 0x234   :  { %v1062_v20 = vmul.f32 0.6931472, %v1773_v14  ;;  %v1103_v57 = vsub.f32 %v2144_v47, %v1087_v32 }
 0x235   :  { %v1775_v28 = vpop.eup %1774  ;;  %1780 = vlog2.f32 %v1012_v63  ;;  %v1017_v60 = vadd.f32 %v1016_v61, %v1015_v55 }
 0x236   :  { %1179 = vperm.xlu2 %1627, %v1775_v28   ;;  %v1777_v30 = vpop.eup %1776  ;;  %v1083_v6 = vadd.f32 %v1062_v20, %v2298_v37  ;;  %1782 = vpow2.f32 %v1123_v15  ;;  %v1133_v0 = vmul.f32 1.442695, %v1103_v57 }
 0x237   :  { %v1408_v5 = vmul.f32 0.6931472, %v1777_v30  ;;  %v1018_v34 = vrot.slane %v1017_v60, 1  ;;  %v1779_v56 = vpop.eup %1778  ;;  %v1095_v30 = vsub.f32 %v2192_v40, %v2318_v26  ;;  %v1096_v26 = vsub.f32 %v2212_v25, %v2335_v4 }
 0x238   :  { %v1099_v24 = vsub.f32 %v2263_v17, %v1083_v6  ;;  %v1072_v31 = vmul.f32 0.6931472, %v1779_v56 }
 0x239   :  { %v1019_v35 = vadd.f32 %v1018_v34, %v1017_v60  ;;  %v1410_v42 = vadd.f32 %v1408_v5, %v2076_v22  ;;  %v1119_v56 = vmul.f32 1.442695, %v1096_v26 }
 0x23a   :  { %v1125_v27 = vmul.f32 1.442695, %v1099_v24  ;;  %v1088_v2 = vadd.f32 %v1072_v31, %v2226_v58  ;;  %v1117_v24 = vmul.f32 1.442695, %v1095_v30 }
 0x23b   :  { %v1781_v38 = vpop.eup %1780  ;;  %v1420_v13 = vrot.slane %v1410_v42, 1  ;;  %v1421_v50 = vrot.slane %v1410_v42, 2  ;;  %v1422_v48 = vrot.slane %v1410_v42, 3  ;;  %v1424_v1 = vrot.slane %v1410_v42, 5 }
 0x23c   :  { %1784 = vpow2.f32 %v1125_v27  ;;  %v1783_v37 = vpop.eup %1782  ;;  %v1064_v18 = vmul.f32 0.6931472, %v1781_v38  ;;  %v1423_v10 = vrot.slane %v1410_v42, 4  ;;  %v1425_v19 = vrot.slane %v1410_v42, 6 }
 0x23d   :  { %1786 = vlog2.f32 %v1019_v35  ;;  %1184 = vperm.xlu0 %1628, %v1783_v37   ;;  %v1452_v16 = vsub.f32 %v1082_v36, %v1420_v13  ;;  %v1453_v47 = vsub.f32 %v1083_v6, %v1421_v50  ;;  %v1104_v58 = vsub.f32 %v2166_v39, %v1088_v2  ;;  %v1804_v13 = vld [vmem:[#allocation2] sm:$0xff] }
 0x23e   :  { %1788 = vpow2.f32 %v1131_v46  ;;  %v1084_v17 = vadd.f32 %v1064_v18, %v2323_v43  ;;  %v1094_v43 = vsub.f32 %v2169_v33, %v2314_v3  ;;  %v1451_v36 = vsub.f32 %v2354_v41, %v1410_v42 }
 0x23f   :  { %1790 = vpow2.f32 %v1133_v0  ;;  %v1489_v59 = vrot.slane %v1452_v16, 7  ;;  %v1491_v21 = vrot.slane %v1453_v47, 6  ;;  %v1426_v11 = vrot.slane %v1410_v42, 7  ;;  %v1805_v0 = vld [vmem:[#allocation2 + $0x8] sm:$0xff]  ;;  %v1806_v16 = vld [vmem:[#allocation2 + $0x10] sm:$0xff] }
 0x240   :  { %v1100_v49 = vsub.f32 %v2284_v7, %v1084_v17  ;;  %v1454_v54 = vsub.f32 %v1084_v17, %v1422_v48  ;;  %v1115_v55 = vmul.f32 1.442695, %v1094_v43  ;;  %v1456_v3 = vsub.f32 %v2367_v45, %v1424_v1 }
 0x241   :  { %v1490_v33 = vsel %vm1361_vm2, %v1489_v59, %v1451_v36  ;;  %v1457_v63 = vsub.f32 %v1087_v32, %v1425_v19  ;;  %v1135_v39 = vmul.f32 1.442695, %v1104_v58  ;;  %v1458_v61 = vsub.f32 %v1088_v2, %v1426_v11  ;;  %v1809_v36 = vld [vmem:[#allocation2 + $0x28] sm:$0xff] }
 0x242   :  { %v1785_v52 = vpop.eup %1784  ;;  %v1127_v22 = vmul.f32 1.442695, %v1100_v49  ;;  %v1493_v12 = vrot.slane %v1454_v54, 5  ;;  %v1497_v45 = vrot.slane %v1456_v3, 3  ;;  %v1808_v54 = vld [vmem:[#allocation2 + $0x20] sm:$0xff]  ;;  %v1811_v3 = vld [vmem:[#allocation2 + $0x48] sm:$0xff] }
 0x243   :  { %v1787_v53 = vpop.eup %1786  ;;  %1189 = vperm.xlu2 %1627, %v1785_v52   ;;  %v1499_v6 = vrot.slane %v1457_v63, 2  ;;  %v1501_v60 = vrot.slane %v1458_v61, 1  ;;  %v1812_v61 = vld [vmem:[#allocation2 + $0x50] sm:$0xff] }
 0x244   :  { %v1066_v51 = vmul.f32 0.6931472, %v1787_v53  ;;  %v1789_v9 = vpop.eup %1788  ;;  %1792 = vpow2.f32 %v1127_v22  ;;  %v1807_v53 = vld [vmem:[#allocation2 + $0x18] sm:$0xff] }
 0x245   :  { %1204 = vperm.xlu0 %1628, %v1789_v9   ;;  %v1791_v28 = vpop.eup %1790 }
 0x246   :  { %v1085_v7 = vadd.f32 %v1066_v51, %v2337_v29  ;;  %v1492_v29 = vsel %vm1363_vm8, %v1491_v21, %v1490_v33 }
 0x247   :  { %v1494_v41 = vsel %vm1365_vm9, %v1493_v12, %v1492_v29 }
 0x248   :  { %v1101_v14 = vsub.f32 %v2305_v44, %v1085_v7  ;;  %v1455_v62 = vsub.f32 %v1085_v7, %v1423_v10 }
 0x24a   :  { %v1129_v8 = vmul.f32 1.442695, %v1101_v14  ;;  %v1495_v20 = vrot.slane %v1455_v62, 4  ;;  %v1793_v15 = vpop.eup %1792  ;;  %v1810_v14 = vld [vmem:[#allocation2 + $0x40] sm:$0xff] }
 0x24b   :  { %1194 = vperm.xlu2 %1627, %v1793_v15  }
 0x24c   :  { %1794 = vpow2.f32 %v1129_v8  ;;  %v1496_v44 = vsel %vm1367_vm10, %v1495_v20, %v1494_v41 }
 0x24d   :  { %1796 = vpow2.f32 %v1115_v55  ;;  %1209 = vperm.xlu0 %1628, %v1791_v28   ;;  %v1498_v23 = vsel %vm1369_vm12, %v1497_v45, %v1496_v44 }
 0x24e   :  { %1798 = vpow2.f32 %v1135_v39  ;;  %v1500_v32 = vsel %vm1371_vm13, %v1499_v6, %v1498_v23  ;;  %v1813_v23 = vld [vmem:[#allocation2 + $0x58] sm:$0xff] }
 0x24f   :  { %v1502_v5 = vsel %vm1373_vm14, %v1501_v60, %v1500_v32  ;;  %1800 = vpow2.f32 %v1117_v24 }
 0x250   :  { %1506 = vst.msk [vmem:[%s2446_s6 + $0x8] sm:$0xff] %vm768_vm7, %v1502_v5  ;;  %1802 = vpow2.f32 %v1119_v56  ;;  %s1876_s6 = smov [#allocation5]  }
 0x251   :  { %s1511_s7 = sshll.u32 %s1876_s6, 4  ;;  %s1512_s7 = int_to_ptr.vmem [resolvable:$true] %s1511_s7 }
 0x252   :  { %v1795_v34 = vpop.eup %1794 }
 0x253   :  { %v1797_v27 = vpop.eup %1796  ;;  %1199 = vperm.xlu1 %1626, %v1795_v34  }
 0x254   :  { %1164 = vperm.xlu2 %1627, %v1797_v27   ;;  %v1799_v40 = vpop.eup %1798  ;;  %v1814_v27 = vld [vmem:[#allocation2 + $0x30] sm:$0xff] }
 0x255   :  { %1214 = vperm.xlu0 %1628, %v1799_v40   ;;  %v1801_v46 = vpop.eup %1800 }
 0x256   :  { %v1803_v35 = vpop.eup %1802 }
 0x25c   :  { %1169 = vperm.xlu2 %1627, %v1801_v46  }
 0x263   :  { %v1140_v38 = vpop.permute.xlu1 %1139 }
 0x264   :  { %1174 = vperm.xlu2 %1627, %v1803_v35   ;;  %v1217_v17 = vmul.f32 %v1804_v13, %v1140_v38 }
 0x266   :  { %v1233_v25 = vsel %vm63_vm0, %v1217_v17, 0.0 }
 0x267   :  { %v1234_v22 = vrot.slane %v1233_v25, 4 }
 0x269   :  { %v1235_v1 = vadd.f32 %v1234_v22, %v1233_v25 }
 0x26b   :  { %v1145_v57 = vpop.permute.xlu1 %1144  ;;  %v1236_v33 = vrot.slane %v1235_v1, 2 }
 0x26c   :  { %v1218_v50 = vmul.f32 %v1805_v0, %v1145_v57 }
 0x26d   :  { %v1237_v45 = vadd.f32 %v1236_v33, %v1235_v1 }
 0x26e   :  { %v1240_v52 = vsel %vm63_vm0, %v1218_v50, 0.0 }
 0x26f   :  { %v1241_v9 = vrot.slane %v1240_v52, 4  ;;  %v1238_v57 = vrot.slane %v1237_v45, 1 }
 0x271   :  { %v1242_v7 = vadd.f32 %v1241_v9, %v1240_v52 }
 0x273   :  { %v1150_v37 = vpop.permute.xlu1 %1149  ;;  %v1243_v8 = vrot.slane %v1242_v7, 2 }
 0x274   :  { %v1219_v49 = vmul.f32 %v1806_v16, %v1150_v37  ;;  %v1815_v37 = vld [vmem:[#allocation2 + $0x68] sm:$0xff] }
 0x275   :  { %v1244_v6 = vadd.f32 %v1243_v8, %v1242_v7 }
 0x276   :  { %v1247_v47 = vsel %vm63_vm0, %v1219_v49, 0.0 }
 0x277   :  { %v1248_v43 = vrot.slane %v1247_v47, 4 }
 0x279   :  { %v1249_v19 = vadd.f32 %v1248_v43, %v1247_v47 }
 0x27b   :  { %v1155_v18 = vpop.permute.xlu1 %1154  ;;  %v1250_v20 = vrot.slane %v1249_v19, 2 }
 0x27c   :  { %v1220_v2 = vmul.f32 %v1807_v53, %v1155_v18 }
 0x27d   :  { %v1251_v26 = vadd.f32 %v1250_v20, %v1249_v19 }
 0x27e   :  { %v1254_v59 = vsel %vm63_vm0, %v1220_v2, 0.0  ;;  %v1239_v2 = vadd.f32 %v1238_v57, %v1237_v45 }
 0x27f   :  { %v1255_v58 = vrot.slane %v1254_v59, 4  ;;  %v1252_v25 = vrot.slane %v1251_v26, 1 }
 0x281   :  { %v1256_v63 = vadd.f32 %v1255_v58, %v1254_v59 }
 0x283   :  { %v1257_v5 = vrot.slane %v1256_v63, 2 }
 0x284   :  { %v1160_v4 = vpop.permute.xlu1 %1159 }
 0x285   :  { %v1221_v51 = vmul.f32 %v1808_v54, %v1160_v4  ;;  %v1258_v50 = vadd.f32 %v1257_v5, %v1256_v63 }
 0x287   :  { %v1261_v21 = vsel %vm63_vm0, %v1221_v51, 0.0  ;;  %v1259_v43 = vrot.slane %v1258_v50, 1 }
 0x288   :  { %v1262_v11 = vrot.slane %v1261_v21, 4 }
 0x289   :  { %v1260_v8 = vadd.f32 %v1259_v43, %v1258_v50 }
 0x28a   :  { %v1263_v39 = vadd.f32 %v1262_v11, %v1261_v21  ;;  %v1816_v21 = vld [vmem:[#allocation2 + $0x38] sm:$0xff] }
 0x28c   :  { %v1264_v56 = vrot.slane %v1263_v39, 2 }
 0x28e   :  { %v1265_v4 = vadd.f32 %v1264_v56, %v1263_v39 }
 0x290   :  { %v1180_v42 = vpop.permute.xlu2 %1179  ;;  %v1266_v19 = vrot.slane %v1265_v4, 1 }
 0x291   :  { %v1225_v62 = vmul.f32 %v1810_v14, %v1180_v42 }
 0x292   :  { %v1267_v45 = vadd.f32 %v1266_v19, %v1265_v4 }
 0x293   :  { %v1289_v41 = vsel %vm63_vm0, %v1225_v62, 0.0  ;;  %v1817_v62 = vld [vmem:[#allocation2 + $0x70] sm:$0xff] }
 0x294   :  { %v1290_v34 = vrot.slane %v1289_v41, 4 }
 0x296   :  { %v1291_v16 = vadd.f32 %v1290_v34, %v1289_v41  ;;  %v1818_v34 = vld [vmem:[#allocation2 + $0x60] sm:$0xff] }
 0x298   :  { %v1292_v59 = vrot.slane %v1291_v16, 2 }
 0x29a   :  { %v1293_v20 = vadd.f32 %v1292_v59, %v1291_v16 }
 0x29d   :  { %v1190_v31 = vpop.permute.xlu2 %1189 }
 0x29e   :  { %v1227_v44 = vmul.f32 %v1812_v61, %v1190_v31  ;;  %v1245_v31 = vrot.slane %v1244_v6, 1 }
 0x2a0   :  { %v1303_v46 = vsel %vm63_vm0, %v1227_v44, 0.0  ;;  %v1246_v22 = vadd.f32 %v1245_v31, %v1244_v6  ;;  %v1819_v31 = vld [vmem:[#allocation2 + $0x78] sm:$0xff] }
 0x2a1   :  { %v1304_v49 = vrot.slane %v1303_v46, 4 }
 0x2a3   :  { %v1305_v1 = vadd.f32 %v1304_v49, %v1303_v46 }
 0x2a5   :  { %v1195_v48 = vpop.permute.xlu2 %1194  ;;  %v1306_v63 = vrot.slane %v1305_v1, 2 }
 0x2a6   :  { %v1228_v60 = vmul.f32 %v1813_v23, %v1195_v48 }
 0x2a7   :  { %v1307_v56 = vadd.f32 %v1306_v63, %v1305_v1 }
 0x2a8   :  { %v1310_v13 = vsel %vm63_vm0, %v1228_v60, 0.0 }
 0x2a9   :  { %v1311_v47 = vrot.slane %v1310_v13, 4  ;;  %v1308_v4 = vrot.slane %v1307_v56, 1 }
 0x2ab   :  { %v1312_v11 = vadd.f32 %v1311_v47, %v1310_v13 }
 0x2ad   :  { %v1313_v6 = vrot.slane %v1312_v11, 2 }
 0x2ae   :  { %v1165_v10 = vpop.permute.xlu2 %1164 }
 0x2af   :  { %v1222_v12 = vmul.f32 %v1809_v36, %v1165_v10  ;;  %v1185_v55 = vpop.permute.xlu0 %1184  ;;  %v1253_v10 = vadd.f32 %v1252_v25, %v1251_v26  ;;  %v1294_v26 = vrot.slane %v1293_v20, 1  ;;  %v1314_v50 = vadd.f32 %v1313_v6, %v1312_v11 }
 0x2b0   :  { %v1226_v28 = vmul.f32 %v1811_v3, %v1185_v55  ;;  %v1362_v3 = vsel %vm1361_vm2, %v1246_v22, %v1239_v2 }
 0x2b1   :  { %v1268_v29 = vsel %vm63_vm0, %v1222_v12, 0.0  ;;  %v1295_v25 = vadd.f32 %v1294_v26, %v1293_v20  ;;  %v1315_v43 = vrot.slane %v1314_v50, 1 }
 0x2b2   :  { %v1296_v15 = vsel %vm63_vm0, %v1226_v28, 0.0  ;;  %v1269_v30 = vrot.slane %v1268_v29, 4 }
 0x2b3   :  { %v1297_v32 = vrot.slane %v1296_v15, 4 }
 0x2b4   :  { %v1270_v35 = vadd.f32 %v1269_v30, %v1268_v29  ;;  %v1364_v30 = vsel %vm1363_vm8, %v1253_v10, %v1362_v3 }
 0x2b5   :  { %v1298_v17 = vadd.f32 %v1297_v32, %v1296_v15 }
 0x2b6   :  { %v1170_v24 = vpop.permute.xlu2 %1169  ;;  %v1271_v48 = vrot.slane %v1270_v35, 2 }
 0x2b7   :  { %v1223_v40 = vmul.f32 %v1814_v27, %v1170_v24  ;;  %v1205_v38 = vpop.permute.xlu0 %1204  ;;  %v1299_v54 = vrot.slane %v1298_v17, 2 }
 0x2b8   :  { %v1230_v42 = vmul.f32 %v1815_v37, %v1205_v38  ;;  %v1272_v58 = vadd.f32 %v1271_v48, %v1270_v35 }
 0x2b9   :  { %v1275_v18 = vsel %vm63_vm0, %v1223_v40, 0.0  ;;  %v1300_v28 = vadd.f32 %v1299_v54, %v1298_v17  ;;  %v1366_v40 = vsel %vm1365_vm9, %v1260_v8, %v1364_v30 }
 0x2ba   :  { %v1276_v0 = vrot.slane %v1275_v18, 4  ;;  %v1324_v53 = vsel %vm63_vm0, %v1230_v42, 0.0  ;;  %v1273_v39 = vrot.slane %v1272_v58, 1 }
 0x2bb   :  { %v1325_v36 = vrot.slane %v1324_v53, 4  ;;  %v1301_v32 = vrot.slane %v1300_v28, 1 }
 0x2bc   :  { %v1277_v52 = vadd.f32 %v1276_v0, %v1275_v18  ;;  %v1274_v46 = vadd.f32 %v1273_v39, %v1272_v58  ;;  %v1368_v0 = vsel %vm1367_vm10, %v1267_v45, %v1366_v40 }
 0x2bd   :  { %v1326_v41 = vadd.f32 %v1325_v36, %v1324_v53  ;;  %v1302_v16 = vadd.f32 %v1301_v32, %v1300_v28 }
 0x2be   :  { %v1278_v51 = vrot.slane %v1277_v52, 2  ;;  %v1175_v9 = vpop.permute.xlu2 %1174  ;;  %v1370_v47 = vsel %vm1369_vm12, %v1274_v46, %v1368_v0 }
 0x2bf   :  { %v1224_v7 = vmul.f32 %v1816_v21, %v1175_v9  ;;  %v1210_v12 = vpop.permute.xlu0 %1209  ;;  %v1327_v35 = vrot.slane %v1326_v41, 2  ;;  %v1375_v59 = vsel %vm1361_vm2, %v1302_v16, %v1295_v25 }
 0x2c0   :  { %v1279_v14 = vadd.f32 %v1278_v51, %v1277_v52  ;;  %v1231_v55 = vmul.f32 %v1817_v62, %v1210_v12 }
 0x2c1   :  { %v1282_v33 = vsel %vm63_vm0, %v1224_v7, 0.0  ;;  %v1328_v53 = vadd.f32 %v1327_v35, %v1326_v41  ;;  %v1309_v7 = vadd.f32 %v1308_v4, %v1307_v56 }
 0x2c2   :  { %v1283_v29 = vrot.slane %v1282_v33, 4  ;;  %v1331_v15 = vsel %vm63_vm0, %v1231_v55, 0.0  ;;  %v1280_v23 = vrot.slane %v1279_v14, 1 }
 0x2c3   :  { %v1332_v61 = vrot.slane %v1331_v15, 4  ;;  %v1329_v19 = vrot.slane %v1328_v53, 1  ;;  %v1376_v36 = vsel %vm1363_vm8, %v1309_v7, %v1375_v59 }
 0x2c4   :  { %v1284_v44 = vadd.f32 %v1283_v29, %v1282_v33  ;;  %v1281_v42 = vadd.f32 %v1280_v23, %v1279_v14  ;;  %v1316_v14 = vadd.f32 %v1315_v43, %v1314_v50 }
 0x2c5   :  { %v1200_v60 = vpop.permute.xlu1 %1199  ;;  %v1333_v24 = vadd.f32 %v1332_v61, %v1331_v15  ;;  %v1330_v33 = vadd.f32 %v1329_v19, %v1328_v53 }
 0x2c6   :  { %v1285_v5 = vrot.slane %v1284_v44, 2  ;;  %v1229_v27 = vmul.f32 %v1818_v34, %v1200_v60  ;;  %v1372_v9 = vsel %vm1371_vm13, %v1281_v42, %v1370_v47  ;;  %v1377_v28 = vsel %vm1365_vm9, %v1316_v14, %v1376_v36 }
 0x2c7   :  { %v1215_v57 = vpop.permute.xlu0 %1214  ;;  %v1334_v18 = vrot.slane %v1333_v24, 2 }
 0x2c8   :  { %v1286_v38 = vadd.f32 %v1285_v5, %v1284_v44  ;;  %v1317_v37 = vsel %vm63_vm0, %v1229_v27, 0.0  ;;  %v1232_v13 = vmul.f32 %v1819_v31, %v1215_v57 }
 0x2c9   :  { %v1318_v17 = vrot.slane %v1317_v37, 4  ;;  %v1335_v54 = vadd.f32 %v1334_v18, %v1333_v24 }
 0x2ca   :  { %v1287_v49 = vrot.slane %v1286_v38, 1  ;;  %v1338_v48 = vsel %vm63_vm0, %v1232_v13, 0.0 }
 0x2cb   :  { %v1319_v52 = vadd.f32 %v1318_v17, %v1317_v37  ;;  %v1339_v22 = vrot.slane %v1338_v48, 4  ;;  %v1336_v12 = vrot.slane %v1335_v54, 1 }
 0x2cc   :  { %v1288_v2 = vadd.f32 %v1287_v49, %v1286_v38 }
 0x2cd   :  { %v1320_v51 = vrot.slane %v1319_v52, 2  ;;  %v1340_v1 = vadd.f32 %v1339_v22, %v1338_v48  ;;  %v1337_v29 = vadd.f32 %v1336_v12, %v1335_v54 }
 0x2ce   :  { %v1374_v21 = vsel %vm1373_vm14, %v1288_v2, %v1372_v9 }
 0x2cf   :  { %v1321_v10 = vadd.f32 %v1320_v51, %v1319_v52  ;;  %1384 = vst.msk [vmem:[#allocation5] sm:$0xff] %vm63_vm0, %v1374_v21  ;;  %v1341_v58 = vrot.slane %v1340_v1, 2 }
 0x2d1   :  { %v1322_v11 = vrot.slane %v1321_v10, 1  ;;  %v1342_v62 = vadd.f32 %v1341_v58, %v1340_v1 }
 0x2d3   :  { %v1323_v55 = vadd.f32 %v1322_v11, %v1321_v10  ;;  %v1343_v3 = vrot.slane %v1342_v62, 1 }
 0x2d5   :  { %v1378_v8 = vsel %vm1367_vm10, %v1323_v55, %v1377_v28  ;;  %v1344_v20 = vadd.f32 %v1343_v3, %v1342_v62 }
 0x2d6   :  { %v1379_v63 = vsel %vm1369_vm12, %v1330_v33, %v1378_v8 }
 0x2d7   :  { %v1380_v15 = vsel %vm1371_vm13, %v1337_v29, %v1379_v63 }
 0x2d8   :  { %v1381_v39 = vsel %vm1373_vm14, %v1344_v20, %v1380_v15 }
 0x2d9   :  { %1385 = vst.msk [vmem:[#allocation5 + $0x8] sm:$0xff] %vm63_vm0, %v1381_v39 }
 0x2da   :  { %1519 = dma.vmem_to_hbm [thread:$0]  %s1512_s7, 256, %s1514_s9, [#allocation4], %s1873_s26, %s1873_s26, %s1874_s27  }
 0x2db   :  { %1870 = dma.done.wait [#allocation4], 256  }
 0x2dc   :  { %1871 = vsyncadd [#allocation4], 4294967040 }
 0x2dd   :  { %1528 = vsyncpa [#allocation3], 1 }
 0x2de   :  { %1529 = vsyncpa [#allocation4], 1 }

</bundles_post_ra>
